<compile_context>
chip_gen: v5e
topology: v5e:2x2
jax: 0.10.0
libtpu: 0.0.40
codegen_flags: <defaults>
</compile_context>

<pallas_src>
import jax
import jax.numpy as jnp
from jax.experimental import pallas as pl
from jax.experimental.pallas import tpu as pltpu

TILE_B = 1024     # max batch tile (multiple of 256; sweep 1024-2048 if desired)
LANE = 128        # lane width; fc4 weights padded up to a multiple of this


def dqn_kernel(x_ref,
               w1_ref, b1_ref,
               w2_ref, b2_ref,
               w3_ref, b3_ref,
               w4_ref, b4_ref,
               o_ref):
    """Fused 4-layer MLP; BN affines are pre-folded into the weights/biases.

    Matmuls run on the MXU with f32 accumulation; bias + ReLU in f32 on the
    VPU. `cdt` (weight dtype) is bf16 on the fast path, f32 on the exact path
    (exact path forces true-f32 matmuls via precision=HIGHEST).
    """
    cdt = w1_ref.dtype
    prec = jax.lax.Precision.HIGHEST if cdt == jnp.float32 else None

    def dense(h, w_ref, b_ref):
        return (jnp.dot(h, w_ref[...], preferred_element_type=jnp.float32,
                        precision=prec)
                + b_ref[...])

    h = x_ref[...].astype(cdt)
    h = jnp.maximum(dense(h, w1_ref, b1_ref), 0.0).astype(cdt)  # relu(bn1(fc1(x)))
    h = jnp.maximum(dense(h, w2_ref, b2_ref), 0.0).astype(cdt)  # relu(bn2(fc2(.))), dropout=id
    h = jnp.maximum(dense(h, w3_ref, b3_ref), 0.0).astype(cdt)  # relu(bn3(fc3(.))), dropout=id

    # fc4: MXU works on the lane-dense (K=128, N=128) padded weights; slice to
    # the real output_dim before the store so HBM writeback is only useful
    # columns (store count unchanged, just a masked vst on a narrow tile).
    out = dense(h, w4_ref, b4_ref)
    o_ref[...] = out[:, :o_ref.shape[1]]


# ----------------------------------------------------------------------------
# Parameter init (mirrors the PyTorch module's __init__) and BN folding.
# ----------------------------------------------------------------------------

def init_dqn_params(key, input_dim, output_dim, hidden_dim=256):
    h2 = hidden_dim // 2
    ks = jax.random.split(key, 8)

    def kaiming_normal(k, fan_in, fan_out):
        std = jnp.sqrt(2.0 / fan_in)                        # nonlinearity='relu'
        return jax.random.normal(k, (fan_in, fan_out), jnp.float32) * std

    def xavier_uniform(k, fan_in, fan_out):
        limit = jnp.sqrt(6.0 / (fan_in + fan_out))
        return jax.random.uniform(k, (fan_in, fan_out), jnp.float32, -limit, limit)

    def bias_init(k, fan_in, fan_out):
        bound = 1.0 / jnp.sqrt(fan_in)                      # PyTorch Linear default
        return jax.random.uniform(k, (1, fan_out), jnp.float32, -bound, bound)

    params = {
        # weights stored pre-transposed: (in_features, out_features)
        "w1": kaiming_normal(ks[0], input_dim, hidden_dim),
        "b1": bias_init(ks[1], input_dim, hidden_dim),
        "w2": kaiming_normal(ks[2], hidden_dim, hidden_dim),
        "b2": bias_init(ks[3], hidden_dim, hidden_dim),
        "w3": kaiming_normal(ks[4], hidden_dim, h2),
        "b3": bias_init(ks[5], hidden_dim, h2),
        "w4": xavier_uniform(ks[6], h2, output_dim),
        "b4": bias_init(ks[7], h2, output_dim),
    }
    for name, dim in (("bn1", hidden_dim), ("bn2", hidden_dim), ("bn3", h2)):
        params[name] = {
            "gamma": jnp.ones((1, dim), jnp.float32),
            "beta": jnp.zeros((1, dim), jnp.float32),
            "mean": jnp.zeros((1, dim), jnp.float32),
            "var": jnp.ones((1, dim), jnp.float32),
        }
    return params


def _fold_bn(bn, eps=1e-5):
    scale = bn["gamma"] / jnp.sqrt(bn["var"] + eps)
    shift = bn["beta"] - bn["mean"] * scale
    return scale, shift


def _prepare_params(params, compute_dtype):
    """Fold eval-mode BN into fc1..fc3; pad fc4 weights to a lane-dense width."""
    s1, t1 = _fold_bn(params["bn1"])
    s2, t2 = _fold_bn(params["bn2"])
    s3, t3 = _fold_bn(params["bn3"])

    w1 = params["w1"] * s1
    b1 = params["b1"] * s1 + t1
    w2 = params["w2"] * s2
    b2 = params["b2"] * s2 + t2
    w3 = params["w3"] * s3
    b3 = params["b3"] * s3 + t3

    out_dim = params["w4"].shape[1]
    out_pad = ((out_dim + LANE - 1) // LANE) * LANE
    w4 = jnp.pad(params["w4"], ((0, 0), (0, out_pad - out_dim)))
    b4 = jnp.pad(params["b4"], ((0, 0), (0, out_pad - out_dim)))

    cast = lambda w: w.astype(compute_dtype)
    # biases stay f32 (added after the f32-accumulated matmul)
    return (cast(w1), b1, cast(w2), b2, cast(w3), b3, cast(w4), b4)


def _round_up(x, m):
    return ((x + m - 1) // m) * m


def _choose_tile_b(B, max_tile):
    """Batch-tile heuristic.

    * tiny batches: single tile of round_up(B, 8) rows (no 256-row padding waste)
    * moderate batches (>= 512 rows) that would fit one tile: split into two
      grid steps so the 'parallel' axis can land work on both v7x TensorCores
    * large batches: cap at max_tile (amortizes per-grid-step overhead)
    """
    b8 = _round_up(B, 8)
    if b8 <= max_tile:
        if b8 >= 512:
            return _round_up((b8 + 1) // 2, 8)
        return b8
    return max_tile


# ----------------------------------------------------------------------------
# Forward wrapper.
# ----------------------------------------------------------------------------

def dqn_forward(params, x, *, compute_dtype=jnp.bfloat16, max_tile_b=TILE_B):
    """x: (B, input_dim) float32, B > 1 (BN branch of the PyTorch forward)."""
    B, input_dim = x.shape
    output_dim = params["w4"].shape[1]

    w1, b1, w2, b2, w3, b3, w4, b4 = _prepare_params(params, compute_dtype)

    # Fast path: ship bf16 activations over the input DMA (kernel casts anyway).
    if compute_dtype != jnp.float32:
        x = x.astype(compute_dtype)

    tile_b = _choose_tile_b(B, max_tile_b)
    n_tiles = pl.cdiv(B, tile_b)
    b_pad = n_tiles * tile_b
    if b_pad != B:
        x = jnp.pad(x, ((0, b_pad - B), (0, 0)))

    def param_spec(arr):
        # Constant block index -> parameter stays VMEM-resident across grid
        # steps (no re-DMA per batch tile).
        return pl.BlockSpec(arr.shape, lambda i: (0, 0))

    out = pl.pallas_call(
        dqn_kernel,
        # Output is the *unpadded* width: ~32x less HBM writeback for
        # output_dim=4 than storing the 128-wide padded fc4 result.
        out_shape=jax.ShapeDtypeStruct((b_pad, output_dim), jnp.float32),
        grid=(n_tiles,),
        in_specs=[
            pl.BlockSpec((tile_b, input_dim), lambda i: (i, 0)),
            param_spec(w1), param_spec(b1),
            param_spec(w2), param_spec(b2),
            param_spec(w3), param_spec(b3),
            param_spec(w4), param_spec(b4),
        ],
        out_specs=pl.BlockSpec((tile_b, output_dim), lambda i: (i, 0)),
        compiler_params=pltpu.CompilerParams(
            dimension_semantics=("parallel",),
            vmem_limit_bytes=32 * 1024 * 1024,
        ),
    )(x, w1, b1, w2, b2, w3, b3, w4, b4)

    return out[:B]


def dqn_forward_ref(params, x, compute_dtype=jnp.float32):
    """Pure-JAX reference mirroring the kernel's precision choices."""
    w1, b1, w2, b2, w3, b3, w4, b4 = _prepare_params(params, compute_dtype)
    output_dim = params["w4"].shape[1]
    prec = jax.lax.Precision.HIGHEST if compute_dtype == jnp.float32 else None

    def dense(h, w, b):
        return jnp.dot(h, w, preferred_element_type=jnp.float32, precision=prec) + b

    h = x.astype(compute_dtype)
    h = jnp.maximum(dense(h, w1, b1), 0.0).astype(compute_dtype)
    h = jnp.maximum(dense(h, w2, b2), 0.0).astype(compute_dtype)
    h = jnp.maximum(dense(h, w3, b3), 0.0).astype(compute_dtype)
    out = dense(h, w4, b4)
    return out[:, :output_dim]


if __name__ == "__main__":
    key = jax.random.PRNGKey(0)
    k_param, k_x1, k_x2, k_x3 = jax.random.split(key, 4)

    input_dim, output_dim, hidden_dim = 32, 4, 256
    params = init_dqn_params(k_param, input_dim, output_dim, hidden_dim)

    # --- Small batch (B=2): exact f32 path and bf16 fast path, single tile of
    #     8 rows (no longer padded to 256).
    x_small = jax.random.normal(k_x1, (2, input_dim), jnp.float32)

    out_f32 = dqn_forward(params, x_small, compute_dtype=jnp.float32)
    jax.block_until_ready(out_f32)
    ref_f32 = dqn_forward_ref(params, x_small, jnp.float32)
    assert out_f32.shape == (2, output_dim)
    assert jnp.allclose(out_f32, ref_f32, atol=1e-3, rtol=1e-3), "f32 mismatch"

    out_bf16 = dqn_forward(params, x_small, compute_dtype=jnp.bfloat16)
    jax.block_until_ready(out_bf16)
    ref_bf16 = dqn_forward_ref(params, x_small, jnp.bfloat16)
    assert out_bf16.shape == (2, output_dim)
    assert jnp.allclose(out_bf16, ref_bf16, atol=1e-2, rtol=1e-2), "bf16 mismatch"
    assert jnp.allclose(out_bf16, ref_f32, atol=5e-2, rtol=5e-2), "bf16 vs f32 drift"

    # --- Multi-step grid: B not a multiple of tile_b (exercises padded-batch
    #     slicing, the 'parallel' axis, and VMEM-resident params across steps).
    x_big = jax.random.normal(k_x2, (300, input_dim), jnp.float32)
    out_big = dqn_forward(params, x_big, compute_dtype=jnp.bfloat16, max_tile_b=128)
    jax.block_until_ready(out_big)
    ref_big = dqn_forward_ref(params, x_big, jnp.bfloat16)
    assert out_big.shape == (300, output_dim)
    assert jnp.allclose(out_big, ref_big, atol=1e-2, rtol=1e-2), "multi-tile mismatch"

    # --- Moderate batch under the default tile: split into 2 grid steps
    #     (keeps v7x's second TensorCore busy).
    x_mid = jax.random.normal(k_x3, (600, input_dim), jnp.float32)
    out_mid = dqn_forward(params, x_mid, compute_dtype=jnp.bfloat16)
    jax.block_until_ready(out_mid)
    ref_mid = dqn_forward_ref(params, x_mid, jnp.bfloat16)
    assert out_mid.shape == (600, output_dim)
    assert jnp.allclose(out_mid, ref_mid, atol=1e-2, rtol=1e-2), "split-tile mismatch"

    print("KERNEL_OK")
</pallas_src>

<mosaic_0001>
module attributes {stable_mosaic.version = 11 : i64} {
  func.func @dqn_kernel(%arg0: i32, %arg1: memref<8x32xf32, #tpu.memory_space<vmem>>, %arg2: memref<32x256xf32, #tpu.memory_space<vmem>>, %arg3: memref<1x256xf32, #tpu.memory_space<vmem>>, %arg4: memref<256x256xf32, #tpu.memory_space<vmem>>, %arg5: memref<1x256xf32, #tpu.memory_space<vmem>>, %arg6: memref<256x128xf32, #tpu.memory_space<vmem>>, %arg7: memref<1x128xf32, #tpu.memory_space<vmem>>, %arg8: memref<128x128xf32, #tpu.memory_space<vmem>>, %arg9: memref<1x128xf32, #tpu.memory_space<vmem>>, %arg10: memref<8x4xf32, #tpu.memory_space<vmem>>) attributes {dimension_semantics = [#tpu.dimension_semantics<parallel>], iteration_bounds = array<i64: 1>, scalar_prefetch = 0 : i64, scratch_operands = 0 : i64, tpu.core_type = #tpu.core_type<tc>, window_params = [{transform_indices = @transform_0, window_bounds = array<i64: 8, 32>}, {pipeline_mode = #tpu.pipeline_mode<synchronous>, transform_indices = @transform_1, window_bounds = array<i64: 32, 256>}, {pipeline_mode = #tpu.pipeline_mode<synchronous>, transform_indices = @transform_2, window_bounds = array<i64: 1, 256>}, {pipeline_mode = #tpu.pipeline_mode<synchronous>, transform_indices = @transform_3, window_bounds = array<i64: 256, 256>}, {pipeline_mode = #tpu.pipeline_mode<synchronous>, transform_indices = @transform_4, window_bounds = array<i64: 1, 256>}, {pipeline_mode = #tpu.pipeline_mode<synchronous>, transform_indices = @transform_5, window_bounds = array<i64: 256, 128>}, {pipeline_mode = #tpu.pipeline_mode<synchronous>, transform_indices = @transform_6, window_bounds = array<i64: 1, 128>}, {pipeline_mode = #tpu.pipeline_mode<synchronous>, transform_indices = @transform_7, window_bounds = array<i64: 128, 128>}, {pipeline_mode = #tpu.pipeline_mode<synchronous>, transform_indices = @transform_8, window_bounds = array<i64: 1, 128>}, {transform_indices = @transform_9, window_bounds = array<i64: 8, 4>}]} {
    %c0 = arith.constant 0 : index
    %c0_0 = arith.constant 0 : index
    %0 = vector.load %arg1[%c0, %c0_0] : memref<8x32xf32, #tpu.memory_space<vmem>>, vector<8x32xf32>
    %c0_1 = arith.constant 0 : index
    %c0_2 = arith.constant 0 : index
    %1 = vector.load %arg2[%c0_1, %c0_2] : memref<32x256xf32, #tpu.memory_space<vmem>>, vector<32x256xf32>
    %cst = arith.constant dense<0.000000e+00> : vector<8x256xf32>
    %2 = tpu.matmul %0, %1, %cst {dimension_numbers = #tpu.dot_dimension_numbers<[1], [0], [0], [1], [0, 0, 1, 1], [], []>, precision = #tpu.contract_precision<fp32>} : vector<8x32xf32>, vector<32x256xf32>, vector<8x256xf32> -> vector<8x256xf32>
    %c0_3 = arith.constant 0 : index
    %c0_4 = arith.constant 0 : index
    %3 = vector.load %arg3[%c0_3, %c0_4] : memref<1x256xf32, #tpu.memory_space<vmem>>, vector<1x256xf32>
    %4 = vector.broadcast %3 : vector<1x256xf32> to vector<8x256xf32>
    %5 = arith.addf %2, %4 : vector<8x256xf32>
    %cst_5 = arith.constant 0.000000e+00 : f32
    %6 = vector.broadcast %cst_5 : f32 to vector<8x256xf32>
    %7 = arith.maximumf %5, %6 : vector<8x256xf32>
    %c0_6 = arith.constant 0 : index
    %c0_7 = arith.constant 0 : index
    %8 = vector.load %arg4[%c0_6, %c0_7] : memref<256x256xf32, #tpu.memory_space<vmem>>, vector<256x256xf32>
    %cst_8 = arith.constant dense<0.000000e+00> : vector<8x256xf32>
    %9 = tpu.matmul %7, %8, %cst_8 {dimension_numbers = #tpu.dot_dimension_numbers<[1], [0], [0], [1], [0, 0, 1, 1], [], []>, precision = #tpu.contract_precision<fp32>} : vector<8x256xf32>, vector<256x256xf32>, vector<8x256xf32> -> vector<8x256xf32>
    %c0_9 = arith.constant 0 : index
    %c0_10 = arith.constant 0 : index
    %10 = vector.load %arg5[%c0_9, %c0_10] : memref<1x256xf32, #tpu.memory_space<vmem>>, vector<1x256xf32>
    %11 = vector.broadcast %10 : vector<1x256xf32> to vector<8x256xf32>
    %12 = arith.addf %9, %11 : vector<8x256xf32>
    %cst_11 = arith.constant 0.000000e+00 : f32
    %13 = vector.broadcast %cst_11 : f32 to vector<8x256xf32>
    %14 = arith.maximumf %12, %13 : vector<8x256xf32>
    %c0_12 = arith.constant 0 : index
    %c0_13 = arith.constant 0 : index
    %15 = vector.load %arg6[%c0_12, %c0_13] : memref<256x128xf32, #tpu.memory_space<vmem>>, vector<256x128xf32>
    %cst_14 = arith.constant dense<0.000000e+00> : vector<8x128xf32>
    %16 = tpu.matmul %14, %15, %cst_14 {dimension_numbers = #tpu.dot_dimension_numbers<[1], [0], [0], [1], [0, 0, 1, 1], [], []>, precision = #tpu.contract_precision<fp32>} : vector<8x256xf32>, vector<256x128xf32>, vector<8x128xf32> -> vector<8x128xf32>
    %c0_15 = arith.constant 0 : index
    %c0_16 = arith.constant 0 : index
    %17 = vector.load %arg7[%c0_15, %c0_16] : memref<1x128xf32, #tpu.memory_space<vmem>>, vector<1x128xf32>
    %18 = vector.broadcast %17 : vector<1x128xf32> to vector<8x128xf32>
    %19 = arith.addf %16, %18 : vector<8x128xf32>
    %cst_17 = arith.constant 0.000000e+00 : f32
    %20 = vector.broadcast %cst_17 : f32 to vector<8x128xf32>
    %21 = arith.maximumf %19, %20 : vector<8x128xf32>
    %c0_18 = arith.constant 0 : index
    %c0_19 = arith.constant 0 : index
    %22 = vector.load %arg8[%c0_18, %c0_19] : memref<128x128xf32, #tpu.memory_space<vmem>>, vector<128x128xf32>
    %cst_20 = arith.constant dense<0.000000e+00> : vector<8x128xf32>
    %23 = tpu.matmul %21, %22, %cst_20 {dimension_numbers = #tpu.dot_dimension_numbers<[1], [0], [0], [1], [0, 0, 1, 1], [], []>, precision = #tpu.contract_precision<fp32>} : vector<8x128xf32>, vector<128x128xf32>, vector<8x128xf32> -> vector<8x128xf32>
    %c0_21 = arith.constant 0 : index
    %c0_22 = arith.constant 0 : index
    %24 = vector.load %arg9[%c0_21, %c0_22] : memref<1x128xf32, #tpu.memory_space<vmem>>, vector<1x128xf32>
    %25 = vector.broadcast %24 : vector<1x128xf32> to vector<8x128xf32>
    %26 = arith.addf %23, %25 : vector<8x128xf32>
    %27 = vector.extract_strided_slice %26 {offsets = [0, 0], sizes = [8, 4], strides = [1, 1]} : vector<8x128xf32> to vector<8x4xf32>
    %c0_23 = arith.constant 0 : index
    %c0_24 = arith.constant 0 : index
    %28 = vector.load %arg10[%c0_23, %c0_24] : memref<8x4xf32, #tpu.memory_space<vmem>>, vector<8x4xf32>
    tpu.vector_store %arg10[%c0_23, %c0_24], %27 {strides = array<i32>} : memref<8x4xf32, #tpu.memory_space<vmem>>, vector<8x4xf32>,
    return
  }
  func.func @transform_0(%arg0: i32) -> (i32, i32) {
    %c0_i32 = arith.constant 0 : i32
    %c0_i32_0 = arith.constant 0 : i32
    return %arg0, %c0_i32 : i32, i32
  }
  func.func @transform_1(%arg0: i32) -> (i32, i32) {
    %c0_i32 = arith.constant 0 : i32
    %c0_i32_0 = arith.constant 0 : i32
    %c0_i32_1 = arith.constant 0 : i32
    return %c0_i32, %c0_i32_0 : i32, i32
  }
  func.func @transform_2(%arg0: i32) -> (i32, i32) {
    %c0_i32 = arith.constant 0 : i32
    %c0_i32_0 = arith.constant 0 : i32
    %c0_i32_1 = arith.constant 0 : i32
    return %c0_i32, %c0_i32_0 : i32, i32
  }
  func.func @transform_3(%arg0: i32) -> (i32, i32) {
    %c0_i32 = arith.constant 0 : i32
    %c0_i32_0 = arith.constant 0 : i32
    %c0_i32_1 = arith.constant 0 : i32
    return %c0_i32, %c0_i32_0 : i32, i32
  }
  func.func @transform_4(%arg0: i32) -> (i32, i32) {
    %c0_i32 = arith.constant 0 : i32
    %c0_i32_0 = arith.constant 0 : i32
    %c0_i32_1 = arith.constant 0 : i32
    return %c0_i32, %c0_i32_0 : i32, i32
  }
  func.func @transform_5(%arg0: i32) -> (i32, i32) {
    %c0_i32 = arith.constant 0 : i32
    %c0_i32_0 = arith.constant 0 : i32
    %c0_i32_1 = arith.constant 0 : i32
    return %c0_i32, %c0_i32_0 : i32, i32
  }
  func.func @transform_6(%arg0: i32) -> (i32, i32) {
    %c0_i32 = arith.constant 0 : i32
    %c0_i32_0 = arith.constant 0 : i32
    %c0_i32_1 = arith.constant 0 : i32
    return %c0_i32, %c0_i32_0 : i32, i32
  }
  func.func @transform_7(%arg0: i32) -> (i32, i32) {
    %c0_i32 = arith.constant 0 : i32
    %c0_i32_0 = arith.constant 0 : i32
    %c0_i32_1 = arith.constant 0 : i32
    return %c0_i32, %c0_i32_0 : i32, i32
  }
  func.func @transform_8(%arg0: i32) -> (i32, i32) {
    %c0_i32 = arith.constant 0 : i32
    %c0_i32_0 = arith.constant 0 : i32
    %c0_i32_1 = arith.constant 0 : i32
    return %c0_i32, %c0_i32_0 : i32, i32
  }
  func.func @transform_9(%arg0: i32) -> (i32, i32) {
    %c0_i32 = arith.constant 0 : i32
    %c0_i32_0 = arith.constant 0 : i32
    return %arg0, %c0_i32 : i32, i32
  }
}

</mosaic_0001>

<bundles_post_ra>
// kernel: tpu_custom_call.1
= control target key start
LH: loop header
LB: loop body
LE: loop exit
PB: predicated region body
PF: predicated region fallthrough
CT: control target
= control target key end

     0   :  { %14 = vsyncpa [#allocation3], 0  ;;  %s5098_s0 = inlined_call_operand.hbm [shape: f32[8,32], index: 0, kind: input, shape index: {}]   ;;  %s5099_s1 = inlined_call_operand.hbm [shape: f32[32,256], index: 1, kind: input, shape index: {}]   ;;  %s5100_s2 = inlined_call_operand.hbm [shape: f32[1,256], index: 2, kind: input, shape index: {}]   ;;  %s5101_s3 = inlined_call_operand.hbm [shape: f32[256,256], index: 3, kind: input, shape index: {}]   ;;  %s5102_s4 = inlined_call_operand.vmem [shape: f32[1,256], index: 4, kind: input, shape index: {}]   ;;  %s5103_s5 = inlined_call_operand.hbm [shape: f32[256,128], index: 5, kind: input, shape index: {}]   ;;  %s5104_s6 = inlined_call_operand.vmem [shape: f32[1,128], index: 6, kind: input, shape index: {}]   ;;  %s5105_s7 = inlined_call_operand.hbm [shape: f32[128,128], index: 7, kind: input, shape index: {}]   ;;  %s5106_s8 = inlined_call_operand.vmem [shape: f32[1,128], index: 8, kind: input, shape index: {}]   ;;  %s5107_s9 = inlined_call_operand.vmem [shape: f32[8,4], index: 9, kind: output, shape index: {}]  }
   0x1   :  { %15 = vsyncpa [#allocation5], 0 }
   0x2   :  { %16 = vsyncpa [#allocation8], 0  ;;  %s33_s11 = sshll.u32 %s5099_s1, 4  ;;  %s34_s11 = int_to_ptr.hbm [resolvable:$true] %s33_s11 }
   0x3   :  { %17 = vsyncpa [#allocation11], 0  ;;  %s3203_s12 = smov [#allocation4]   ;;  %s57_s16 = sshll.u32 %s5101_s3, 4  ;;  %s58_s16 = int_to_ptr.hbm [resolvable:$true] %s57_s16 }
   0x4   :  { %s35_s13 = sshll.u32 %s3203_s12, 4  ;;  %s3204_s17 = smov 256   ;;  %s36_s13 = int_to_ptr.vmem [resolvable:$true] %s35_s13 }
   0x5   :  { %s3205_s18 = smov 16   ;;  %s3206_s19 = smov [#allocation7]  }
   0x6   :  { %41 = dma.hbm_to_vmem [thread:$0]  %s34_s11, 1024, %s36_s13, [#allocation5], %s3204_s17, %s3204_s17, %s3205_s18  }
   0x7   :  { %s59_s20 = sshll.u32 %s3206_s19, 4  ;;  %s23_s23 = sshll.u32 %s5098_s0, 4  ;;  %s60_s20 = int_to_ptr.vmem [resolvable:$true] %s59_s20  ;;  %s24_s23 = int_to_ptr.hbm [resolvable:$true] %s23_s23 }
   0x8   :  { %65 = dma.hbm_to_vmem [thread:$0]  %s58_s16, 8192, %s60_s20, [#allocation8], %s3204_s17, %s3204_s17, %s3205_s18  }
   0x9   :  { %s47_s25 = sshll.u32 %s5100_s2, 4  ;;  %s3207_s26 = smov [#allocation2]   ;;  %s48_s25 = int_to_ptr.hbm [resolvable:$true] %s47_s25 }
   0xa   :  { %s25_s27 = sshll.u32 %s3207_s26, 4  ;;  %s3208_s3 = smov [#allocation6]   ;;  %s26_s27 = int_to_ptr.vmem [resolvable:$true] %s25_s27 }
   0xb   :  { %28 = dma.hbm_to_vmem [thread:$0]  %s24_s23, 128, %s26_s27, [#allocation3]  }
   0xc   :  { %s49_s28 = sshll.u32 %s3208_s3, 4  ;;  %s72_s10 = sshll.u32 %s5103_s5, 4  ;;  %s50_s28 = int_to_ptr.vmem [resolvable:$true] %s49_s28  ;;  %s73_s10 = int_to_ptr.hbm [resolvable:$true] %s72_s10 }
   0xd   :  { %52 = dma.hbm_to_vmem [thread:$0]  %s48_s25, 32, %s50_s28, [#allocation5]  }
   0xe   :  { %s3209_s0 = smov [#allocation9]   ;;  %s87_s2 = sshll.u32 %s5105_s7, 4  ;;  %s88_s2 = int_to_ptr.hbm [resolvable:$true] %s87_s2 }
   0xf   :  { %s74_s11 = sshll.u32 %s3209_s0, 4  ;;  %s3210_s14 = smov 128   ;;  %s75_s11 = int_to_ptr.vmem [resolvable:$true] %s74_s11 }
  0x10   :  { %s3211_s15 = smov 8   ;;  %s3212_s16 = smov [#allocation10]  }
  0x11   :  { %80 = dma.hbm_to_vmem [thread:$0]  %s73_s10, 4096, %s75_s11, [#allocation8], %s3210_s14, %s3210_s14, %s3211_s15  }
  0x12   :  { %s89_s17 = sshll.u32 %s3212_s16, 4  ;;  %s90_s17 = int_to_ptr.vmem [resolvable:$true] %s89_s17 }
  0x13   :  { %95 = dma.hbm_to_vmem [thread:$0]  %s88_s2, 2048, %s90_s17, [#allocation11], %s3210_s14, %s3210_s14, %s3211_s15  }
  0x14   :  { %3195 = dma.done.wait [#allocation3], 128  }
  0x15   :  { %3196 = vsyncadd [#allocation3], 4294967168 }
  0x16   :  { %3197 = dma.done.wait [#allocation5], 1056  }
  0x17   :  { %3198 = vsyncadd [#allocation5], 4294966240 }
  0x18   :  { %3199 = dma.done.wait [#allocation8], 12288  }
  0x19   :  { %3200 = vsyncadd [#allocation8], 4294955008 }
  0x1a   :  { %3201 = dma.done.wait [#allocation11], 2048  }
  0x1b   :  { %3202 = vsyncadd [#allocation11], 4294965248  ;;  %vm137_vm0 = vcmask 261120   ;;  %v129_v0 = vld [vmem:[#allocation4 + $0x30] sm:$0xff]  ;;  %v127_v1 = vld [vmem:[#allocation4 + $0x20] sm:$0xff]  ;;  %vm3029_vm1 = vcmask 31744  }
  0x1c   :  { %v125_v2 = vld [vmem:[#allocation4 + $0x10] sm:$0xff]  ;;  %v3281_v3 = vand.u32 4294901760, %v129_v0  ;;  %v3283_v4 = vand.u32 4294901760, %v127_v1  ;;  %v123_v6 = vld [vmem:[#allocation4] sm:$0xff]  ;;  %v122_v7 = vld [vmem:[#allocation2] sm:$0xff] }
  0x1d   :  { %v3285_v5 = vand.u32 4294901760, %v125_v2  ;;  %v130_v8 = vld [vmem:[#allocation4 + $0x38] sm:$0xff]  ;;  %v3287_v9 = vand.u32 4294901760, %v123_v6  ;;  %v139_v10 = vsel %vm137_vm0, %v122_v7, 0  ;;  %v128_v12 = vld [vmem:[#allocation4 + $0x28] sm:$0xff] }
  0x1e   :  { %v3289_v11 = vand.u32 4294901760, %v130_v8  ;;  %v126_v13 = vld [vmem:[#allocation4 + $0x18] sm:$0xff]  ;;  %154 = vmatpush.msra.mxu2 %v3281_v3  ;;  %v183_v14 = vsub.f32 %v129_v0, %v3281_v3  ;;  %v3293_v15 = vand.u32 4294901760, %v139_v10  ;;  %v189_v16 = vsub.f32 %v127_v1, %v3283_v4  ;;  %v124_v26 = vld [vmem:[#allocation4 + $0x8] sm:$0xff] }
  0x1f   :  { %v3297_v17 = vsub.f32 %v125_v2, %v3285_v5  ;;  %v3300_v18 = vsub.f32 %v123_v6, %v3287_v9  ;;  %v3305_v20 = vand.u32 4294901760, %v128_v12  ;;  %v3307_v21 = vand.u32 4294901760, %v126_v13  ;;  %v543_v43 = vld [vmem:[#allocation7 + $0xf0] sm:$0xff]  ;;  %v541_v44 = vld [vmem:[#allocation7 + $0xe0] sm:$0xff] }
  0x20   :  { %v3303_v19 = vsub.f32 %v130_v8, %v3289_v11  ;;  %439 = vmatpush.msra.mxu1 %v3289_v11  ;;  %156 = vmatpush.msra.mxu2 %v3283_v4  ;;  %v184_v22 = vand.u32 4294901760, %v183_v14  ;;  %v162_v23 = vsub.f32 %v139_v10, %v3293_v15  ;;  %v190_v24 = vand.u32 4294901760, %v189_v16  ;;  %v539_v45 = vld [vmem:[#allocation7 + $0xd0] sm:$0xff]  ;;  %v537_v49 = vld [vmem:[#allocation7 + $0xc0] sm:$0xff] }
  0x21   :  { %v196_v25 = vand.u32 4294901760, %v3297_v17  ;;  %v202_v27 = vand.u32 4294901760, %v3300_v18  ;;  %v3315_v28 = vsub.f32 %v128_v12, %v3305_v20  ;;  %v3323_v33 = vand.u32 4294901760, %v124_v26  ;;  %v535_v54 = vld [vmem:[#allocation7 + $0xb0] sm:$0xff]  ;;  %v533_v61 = vld [vmem:[#allocation7 + $0xa0] sm:$0xff] }
  0x22   :  { %410 = vmatpush.msra.mxu0 %v3303_v19  ;;  %441 = vmatpush.msra.mxu1 %v3305_v20  ;;  %v185_v29 = vsub.f32 %v183_v14, %v184_v22  ;;  %v3320_v30 = vand.u32 4294901760, %v162_v23  ;;  %v191_v31 = vsub.f32 %v189_v16, %v190_v24  ;;  %v3326_v34 = vsub.f32 %v126_v13, %v3307_v21  ;;  %v531_v7 = vld [vmem:[#allocation7 + $0x90] sm:$0xff] }
  0x23   :  { %158 = vmatpush.msra.mxu2 %v3285_v5  ;;  %v197_v32 = vsub.f32 %v3297_v17, %v196_v25  ;;  %v203_v38 = vsub.f32 %v3300_v18, %v202_v27  ;;  %v3340_v41 = vsub.f32 %v124_v26, %v3323_v33  ;;  %v3349_v46 = vand.u32 4294901760, %v543_v43 }
  0x24   :  { %413 = vmatpush.msra.mxu0 %v3315_v28  ;;  %443 = vmatpush.msra.mxu1 %v3307_v21  ;;  %v186_v35 = vand.u32 4294901760, %v185_v29  ;;  %v164_v36 = vsub.f32 %v162_v23, %v3320_v30  ;;  %v192_v37 = vand.u32 4294901760, %v191_v31  ;;  %v3351_v47 = vand.u32 4294901760, %v541_v44  ;;  %v527_v29 = vld [vmem:[#allocation7 + $0x70] sm:$0xff] }
  0x25   :  { %160 = vmatpush.msra.mxu2 %v3287_v9  ;;  %v198_v40 = vand.u32 4294901760, %v197_v32  ;;  %v204_v42 = vand.u32 4294901760, %v203_v38  ;;  %v3353_v48 = vand.u32 4294901760, %v539_v45  ;;  %v3355_v50 = vand.u32 4294901760, %v537_v49 }
  0x26   :  { %416 = vmatpush.msra.mxu0 %v3326_v34  ;;  %187 = vmatpush.msra.mxu3 %v186_v35  ;;  %v3336_v39 = vand.u32 4294901760, %v164_v36  ;;  %v3359_v51 = vsub.f32 %v543_v43, %v3349_v46  ;;  %v3362_v52 = vsub.f32 %v541_v44, %v3351_v47  ;;  %v3371_v56 = vand.u32 4294901760, %v535_v54 }
  0x27   :  { %225 = vmatpush.msrb.mxu2 %v183_v14  ;;  %445 = vmatpush.msra.mxu1 %v3323_v33  ;;  %v3365_v53 = vsub.f32 %v539_v45, %v3353_v48  ;;  %v3368_v55 = vsub.f32 %v537_v49, %v3355_v50  ;;  %v369_v57 = vand.u32 4294901760, %v3303_v19  ;;  %v3385_v0 = vand.u32 4294901760, %v533_v61  ;;  %v523_v45 = vld [vmem:[#allocation7 + $0x50] sm:$0xff] }
  0x28   :  { %449 = vmatmul.f32.vlgmr.msra.gmra.mxu1 %v3320_v30  ;;  %166 = vmatmul.f32.vlgmr.msra.gmra.mxu2 %v3336_v39  ;;  %v626_v58 = vand.u32 4294901760, %v3359_v51  ;;  %v632_v59 = vand.u32 4294901760, %v3362_v52  ;;  %v3382_v63 = vsub.f32 %v535_v54, %v3371_v56  ;;  %v375_v1 = vand.u32 4294901760, %v3315_v28 }
  0x29   :  { %228 = vmatpush.msrb.mxu2 %v189_v16  ;;  %193 = vmatpush.msra.mxu3 %v192_v37  ;;  %v638_v60 = vand.u32 4294901760, %v3365_v53  ;;  %v644_v62 = vand.u32 4294901760, %v3368_v55  ;;  %v3402_v12 = vsub.f32 %v533_v61, %v3385_v0  ;;  %v3405_v13 = vand.u32 4294901760, %v531_v7  ;;  %v525_v37 = vld [vmem:[#allocation7 + $0x60] sm:$0xff] }
  0x2a   :  { %419 = vmatpush.msra.mxu0 %v3340_v41  ;;  %v627_v2 = vsub.f32 %v3359_v51, %v626_v58  ;;  %v633_v6 = vsub.f32 %v3362_v52, %v632_v59  ;;  %v650_v10 = vand.u32 4294901760, %v3382_v63  ;;  %v370_v14 = vsub.f32 %v3303_v19, %v369_v57 }
  0x2b   :  { %231 = vmatpush.msrb.mxu2 %v3297_v17  ;;  %199 = vmatpush.msra.mxu3 %v198_v40  ;;  %v639_v8 = vsub.f32 %v3365_v53, %v638_v60  ;;  %v381_v16 = vand.u32 4294901760, %v3326_v34  ;;  %v387_v19 = vand.u32 4294901760, %v3340_v41  ;;  %v3430_v32 = vand.u32 4294901760, %v527_v29 }
  0x2c   :  { %422 = vmatmul.f32.vlgmr.msra.gmra.mxu0 %v162_v23  ;;  %v628_v17 = vand.u32 4294901760, %v627_v2  ;;  %v651_v26 = vsub.f32 %v3382_v63, %v650_v10  ;;  %v521_v2 = vld [vmem:[#allocation7 + $0x40] sm:$0xff] }
  0x2d   :  { %234 = vmatpush.msrb.mxu2 %v3300_v18  ;;  %205 = vmatpush.msra.mxu3 %v204_v42  ;;  %v529_v18 = vld [vmem:[#allocation7 + $0x80] sm:$0xff]  ;;  %v3443_v40 = vsub.f32 %v527_v29, %v3430_v32  ;;  %v388_v42 = vsub.f32 %v3340_v41, %v387_v19 }
  0x2e   :  { %207 = vmatmul.f32.vlgmr.msra.gmra.mxu3 %v3293_v15  ;;  %584 = vmatpush.msrb.mxu0 %v3349_v46  ;;  %v652_v43 = vand.u32 4294901760, %v651_v26 }
  0x2f   :  { %283 = vmatpush.msra.mxu2 %v184_v22  ;;  %254 = vmatpush.msrb.mxu3 %v3281_v3  ;;  %v634_v22 = vand.u32 4294901760, %v633_v6  ;;  %v674_v54 = vand.u32 4294901760, %v3443_v40 }
  0x30   :  { %237 = vmatmul.f32.vlgmr.msrb.gmra.mxu2 %v162_v23  ;;  %586 = vmatpush.msrb.mxu0 %v3351_v47  ;;  %v645_v23 = vsub.f32 %v3368_v55, %v644_v62 }
  0x31   :  { %287 = vmatpush.msra.mxu2 %v190_v24  ;;  %256 = vmatpush.msrb.mxu3 %v3283_v4  ;;  %v656_v24 = vand.u32 4294901760, %v3402_v12 }
  0x32   :  { %588 = vmatpush.msrb.mxu0 %v3353_v48  ;;  %629 = vmatpush.msrb.mxu1 %v628_v17  ;;  %v646_v38 = vand.u32 4294901760, %v645_v23  ;;  %v519_v17 = vld [vmem:[#allocation7 + $0x30] sm:$0xff] }
  0x33   :  { %291 = vmatpush.msra.mxu2 %v196_v25  ;;  %258 = vmatpush.msrb.mxu3 %v3285_v5  ;;  %v3416_v25 = vsub.f32 %v531_v7, %v3405_v13  ;;  %v657_v35 = vsub.f32 %v3402_v12, %v656_v24  ;;  %v3479_v26 = vand.u32 4294901760, %v519_v17 }
  0x34   :  { %590 = vmatpush.msrb.mxu0 %v3355_v50  ;;  %635 = vmatpush.msrb.mxu1 %v634_v22  ;;  %v675_v22 = vsub.f32 %v3443_v40, %v674_v54 }
  0x35   :  { %295 = vmatpush.msra.mxu2 %v202_v27  ;;  %260 = vmatpush.msrb.mxu3 %v3287_v9  ;;  %v3426_v27 = vand.u32 4294901760, %v529_v18  ;;  %v662_v31 = vand.u32 4294901760, %v3416_v25 }
  0x36   :  { %264 = vmatmul.f32.vlgmr.msrb.gmra.mxu3 %v3320_v30  ;;  %v640_v30 = vand.u32 4294901760, %v639_v8  ;;  %592 = vmatpush.msrb.mxu0 %v3371_v56 }
  0x37   :  { %339 = vmatpush.msrb.mxu2 %v3289_v11  ;;  %314 = vmatpush.msra.mxu3 %v3281_v3  ;;  %v376_v3 = vsub.f32 %v3315_v28, %v375_v1  ;;  %v382_v28 = vsub.f32 %v3326_v34, %v381_v16  ;;  %v3438_v36 = vsub.f32 %v529_v18, %v3426_v27 }
  0x38   :  { %297 = vmatmul.f32.vlgmr.msra.gmra.mxu2 %v3293_v15  ;;  %641 = vmatpush.msrb.mxu1 %v640_v30  ;;  %v663_v49 = vsub.f32 %v3416_v25, %v662_v31 }
  0x39   :  { %341 = vmatpush.msrb.mxu2 %v3305_v20  ;;  %316 = vmatpush.msra.mxu3 %v3283_v4  ;;  %v371_v4 = vand.u32 4294901760, %v370_v14  ;;  %v377_v34 = vand.u32 4294901760, %v376_v3  ;;  %v668_v44 = vand.u32 4294901760, %v3438_v36  ;;  %v383_v41 = vand.u32 4294901760, %v382_v28 }
  0x3a   :  { %647 = vmatpush.msrb.mxu1 %v646_v38  ;;  %594 = vmatpush.msrb.mxu0 %v3385_v0  ;;  %v3468_v14 = vand.u32 4294901760, %v521_v2  ;;  %v664_v18 = vand.u32 4294901760, %v663_v49  ;;  %v3489_v28 = vsub.f32 %v519_v17, %v3479_v26 }
  0x3b   :  { %343 = vmatpush.msrb.mxu2 %v3307_v21  ;;  %318 = vmatpush.msra.mxu3 %v3285_v5  ;;  %v3445_v5 = vand.u32 4294901760, %v525_v37  ;;  %v669_v6 = vsub.f32 %v3438_v36, %v668_v44 }
  0x3c   :  { %653 = vmatpush.msrb.mxu1 %v652_v43  ;;  %v3475_v23 = vsub.f32 %v521_v2, %v3468_v14  ;;  %596 = vmatpush.msrb.mxu0 %v3405_v13  ;;  %v513_v43 = vld [vmem:[#allocation7] sm:$0xff] }
  0x3d   :  { %345 = vmatpush.msrb.mxu2 %v3323_v33  ;;  %320 = vmatpush.msra.mxu3 %v3287_v9  ;;  %v3456_v61 = vsub.f32 %v525_v37, %v3445_v5  ;;  %v3458_v9 = vand.u32 4294901760, %v523_v45 }
  0x3e   :  { %322 = vmatmul.f32.vlgmr.msra.gmra.mxu3 %v3293_v15  ;;  %598 = vmatpush.msrb.mxu0 %v3426_v27 }
  0x3f   :  { %468 = vmatpush.msra.mxu2 %v369_v57  ;;  %372 = vmatpush.msrb.mxu3 %v371_v4  ;;  %v658_v57 = vand.u32 4294901760, %v657_v35  ;;  %v680_v7 = vand.u32 4294901760, %v3456_v61  ;;  %v3466_v8 = vsub.f32 %v523_v45, %v3458_v9  ;;  %v692_v4 = vand.u32 4294901760, %v3475_v23  ;;  %v515_v35 = vld [vmem:[#allocation7 + $0x10] sm:$0xff] }
  0x40   :  { %351 = vmatmul.f32.vlgmr.msrb.gmra.mxu2 %v3336_v39  ;;  %v517_v39 = vld [vmem:[#allocation7 + $0x20] sm:$0xff]  ;;  %v3495_v38 = vand.u32 4294901760, %v515_v35  ;;  %600 = vmatpush.msrb.mxu0 %v3430_v32 }
  0x41   :  { %472 = vmatpush.msra.mxu2 %v375_v1  ;;  %378 = vmatpush.msrb.mxu3 %v377_v34  ;;  %v389_v1 = vand.u32 4294901760, %v388_v42  ;;  %v686_v3 = vand.u32 4294901760, %v3466_v8  ;;  %v681_v29 = vsub.f32 %v3456_v61, %v680_v7  ;;  %v3484_v30 = vand.u32 4294901760, %v517_v39 }
  0x42   :  { %659 = vmatpush.msrb.mxu1 %v658_v57  ;;  %v698_v42 = vand.u32 4294901760, %v3489_v28  ;;  %v3505_v49 = vsub.f32 %v515_v35, %v3495_v38  ;;  %602 = vmatpush.msrb.mxu0 %v3445_v5 }
  0x43   :  { %476 = vmatpush.msra.mxu2 %v381_v16  ;;  %384 = vmatpush.msrb.mxu3 %v383_v41  ;;  %v670_v16 = vand.u32 4294901760, %v669_v6  ;;  %v3493_v37 = vsub.f32 %v517_v39, %v3484_v30  ;;  %v687_v34 = vsub.f32 %v3466_v8, %v686_v3  ;;  %v682_v45 = vand.u32 4294901760, %v681_v29 }
  0x44   :  { %665 = vmatpush.msrb.mxu1 %v664_v18  ;;  %v3507_v41 = vand.u32 4294901760, %v513_v43  ;;  %604 = vmatpush.msrb.mxu0 %v3458_v9 }
  0x45   :  { %480 = vmatpush.msra.mxu2 %v387_v19  ;;  %390 = vmatpush.msrb.mxu3 %v389_v1  ;;  %v676_v19 = vand.u32 4294901760, %v675_v22  ;;  %v704_v57 = vand.u32 4294901760, %v3493_v37  ;;  %v688_v6 = vand.u32 4294901760, %v687_v34  ;;  %v710_v1 = vand.u32 4294901760, %v3505_v49 }
  0x46   :  { %392 = vmatmul.f32.vlgmr.msrb.gmra.mxu3 %v3293_v15  ;;  %671 = vmatpush.msrb.mxu1 %v670_v16  ;;  %v3517_v2 = vsub.f32 %v513_v43, %v3507_v41 }
  0x47   :  { %727 = vmatpush.msrb.mxu2 %v3359_v51  ;;  %499 = vmatpush.msra.mxu3 %v3289_v11  ;;  %v693_v11 = vsub.f32 %v3475_v23, %v692_v4 }
  0x48   :  { %482 = vmatmul.f32.vlgmr.msra.gmra.mxu2 %v3293_v15  ;;  %677 = vmatpush.msrb.mxu1 %v676_v19  ;;  %v716_v18 = vand.u32 4294901760, %v3517_v2 }
  0x49   :  { %730 = vmatpush.msrb.mxu2 %v3362_v52  ;;  %501 = vmatpush.msra.mxu3 %v3305_v20  ;;  %v699_v20 = vsub.f32 %v3489_v28, %v698_v42  ;;  %v694_v17 = vand.u32 4294901760, %v693_v11  ;;  %v571_v52 = vld [vmem:[#allocation7 + $0x1d0] sm:$0xff] }
  0x4a   :  { %683 = vmatpush.msrb.mxu1 %v682_v45  ;;  %606 = vmatpush.msrb.mxu0 %v3468_v14 }
  0x4b   :  { %733 = vmatpush.msrb.mxu2 %v3365_v53  ;;  %503 = vmatpush.msra.mxu3 %v3307_v21  ;;  %v705_v21 = vsub.f32 %v3493_v37, %v704_v57  ;;  %v700_v22 = vand.u32 4294901760, %v699_v20 }
  0x4c   :  { %689 = vmatpush.msrb.mxu1 %v688_v6  ;;  %608 = vmatpush.msrb.mxu0 %v3479_v26 }
  0x4d   :  { %736 = vmatpush.msrb.mxu2 %v3368_v55  ;;  %505 = vmatpush.msra.mxu3 %v3323_v33  ;;  %v711_v33 = vsub.f32 %v3505_v49, %v710_v1  ;;  %v706_v39 = vand.u32 4294901760, %v705_v21  ;;  %v3631_v55 = vand.u32 4294901760, %v571_v52  ;;  %v553_v21 = vld [vmem:[#allocation7 + $0x140] sm:$0xff] }
  0x4e   :  { %507 = vmatmul.f32.vlgmr.msra.gmra.mxu3 %v3293_v15  ;;  %695 = vmatpush.msrb.mxu1 %v694_v17  ;;  %v717_v15 = vsub.f32 %v3517_v2, %v716_v18 }
  0x4f   :  { %739 = vmatpush.msrb.mxu2 %v3382_v63  ;;  %780 = vmatpush.msrb.mxu3 %v3349_v46  ;;  %v712_v16 = vand.u32 4294901760, %v711_v33  ;;  %v3644_v63 = vsub.f32 %v571_v52, %v3631_v55  ;;  %v3721_v33 = vand.u32 4294901760, %v553_v21 }
  0x50   :  { %701 = vmatpush.msrb.mxu1 %v700_v22  ;;  %v718_v29 = vand.u32 4294901760, %v717_v15  ;;  %610 = vmatpush.msrb.mxu0 %v3484_v30 }
  0x51   :  { %742 = vmatpush.msrb.mxu2 %v3402_v12  ;;  %782 = vmatpush.msrb.mxu3 %v3351_v47 }
  0x52   :  { %707 = vmatpush.msrb.mxu1 %v706_v39  ;;  %612 = vmatpush.msrb.mxu0 %v3495_v38 }
  0x53   :  { %745 = vmatpush.msrb.mxu2 %v3416_v25  ;;  %784 = vmatpush.msrb.mxu3 %v3353_v48 }
  0x54   :  { %713 = vmatpush.msrb.mxu1 %v712_v16  ;;  %614 = vmatpush.msrb.mxu0 %v3507_v41  ;;  %v551_v16 = vld [vmem:[#allocation7 + $0x130] sm:$0xff] }
  0x55   :  { %748 = vmatpush.msrb.mxu2 %v3438_v36  ;;  %786 = vmatpush.msrb.mxu3 %v3355_v50  ;;  %v3731_v52 = vand.u32 4294901760, %v551_v16 }
  0x56   :  { %719 = vmatpush.msrb.mxu1 %v718_v29  ;;  %821 = vmatpush.msra.mxu0 %v626_v58  ;;  %v569_v58 = vld [vmem:[#allocation7 + $0x1c0] sm:$0xff] }
  0x57   :  { %751 = vmatpush.msrb.mxu2 %v3443_v40  ;;  %788 = vmatpush.msrb.mxu3 %v3371_v56 }
  0x58   :  { %888 = vmatpush.msra.mxu1 %v3349_v46  ;;  %825 = vmatpush.msra.mxu0 %v632_v59  ;;  %v575_v46 = vld [vmem:[#allocation7 + $0x1f0] sm:$0xff] }
  0x59   :  { %754 = vmatpush.msrb.mxu2 %v3456_v61  ;;  %790 = vmatpush.msrb.mxu3 %v3385_v0 }
  0x5a   :  { %890 = vmatpush.msra.mxu1 %v3351_v47  ;;  %829 = vmatpush.msra.mxu0 %v638_v60  ;;  %v3621_v47 = vand.u32 4294901760, %v575_v46 }
  0x5b   :  { %757 = vmatpush.msrb.mxu2 %v3466_v8  ;;  %792 = vmatpush.msrb.mxu3 %v3405_v13 }
  0x5c   :  { %892 = vmatpush.msra.mxu1 %v3353_v48  ;;  %833 = vmatpush.msra.mxu0 %v644_v62  ;;  %v573_v48 = vld [vmem:[#allocation7 + $0x1e0] sm:$0xff]  ;;  %v3641_v62 = vand.u32 4294901760, %v569_v58 }
  0x5d   :  { %760 = vmatpush.msrb.mxu2 %v3475_v23  ;;  %794 = vmatpush.msrb.mxu3 %v3426_v27  ;;  %v3627_v51 = vand.u32 4294901760, %v573_v48 }
  0x5e   :  { %894 = vmatpush.msra.mxu1 %v3355_v50  ;;  %837 = vmatpush.msra.mxu0 %v650_v10  ;;  %v3625_v50 = vsub.f32 %v575_v46, %v3621_v47  ;;  %v3654_v25 = vsub.f32 %v569_v58, %v3641_v62  ;;  %v3734_v58 = vsub.f32 %v553_v21, %v3721_v33 }
  0x5f   :  { %763 = vmatpush.msrb.mxu2 %v3489_v28  ;;  %796 = vmatpush.msrb.mxu3 %v3430_v32  ;;  %v559_v28 = vld [vmem:[#allocation7 + $0x170] sm:$0xff] }
  0x60   :  { %896 = vmatpush.msra.mxu1 %v3371_v56  ;;  %841 = vmatpush.msra.mxu0 %v656_v24  ;;  %v967_v53 = vand.u32 4294901760, %v3625_v50  ;;  %v3634_v56 = vsub.f32 %v573_v48, %v3627_v51 }
  0x61   :  { %766 = vmatpush.msrb.mxu2 %v3493_v37  ;;  %798 = vmatpush.msrb.mxu3 %v3445_v5 }
  0x62   :  { %898 = vmatpush.msra.mxu1 %v3385_v0  ;;  %845 = vmatpush.msra.mxu0 %v662_v31  ;;  %v968_v59 = vsub.f32 %v3625_v50, %v967_v53  ;;  %v973_v60 = vand.u32 4294901760, %v3634_v56  ;;  %v567_v0 = vld [vmem:[#allocation7 + $0x1b0] sm:$0xff] }
  0x63   :  { %769 = vmatpush.msrb.mxu2 %v3505_v49  ;;  %800 = vmatpush.msrb.mxu3 %v3458_v9  ;;  %v3651_v24 = vand.u32 4294901760, %v567_v0 }
  0x64   :  { %900 = vmatpush.msra.mxu1 %v3405_v13  ;;  %849 = vmatpush.msra.mxu0 %v668_v44  ;;  %v969_v10 = vand.u32 4294901760, %v968_v59  ;;  %v974_v12 = vsub.f32 %v3634_v56, %v973_v60  ;;  %v979_v13 = vand.u32 4294901760, %v3644_v63  ;;  %v563_v44 = vld [vmem:[#allocation7 + $0x190] sm:$0xff]  ;;  %v549_v59 = vld [vmem:[#allocation7 + $0x120] sm:$0xff] }
  0x65   :  { %772 = vmatpush.msrb.mxu2 %v3517_v2  ;;  %802 = vmatpush.msrb.mxu3 %v3468_v14  ;;  %v3663_v40 = vsub.f32 %v567_v0, %v3651_v24 }
  0x66   :  { %902 = vmatpush.msra.mxu1 %v3426_v27  ;;  %853 = vmatpush.msra.mxu0 %v674_v54  ;;  %v565_v27 = vld [vmem:[#allocation7 + $0x1a0] sm:$0xff]  ;;  %v975_v31 = vand.u32 4294901760, %v974_v12  ;;  %v3740_v12 = vand.u32 4294901760, %v549_v59 }
  0x67   :  { %804 = vmatpush.msrb.mxu3 %v3479_v26  ;;  %925 = vmatpush.msra.mxu2 %v3621_v47  ;;  %v3660_v36 = vand.u32 4294901760, %v565_v27  ;;  %v991_v61 = vand.u32 4294901760, %v3663_v40 }
  0x68   :  { %904 = vmatpush.msra.mxu1 %v3430_v32  ;;  %857 = vmatpush.msra.mxu0 %v680_v7  ;;  %v980_v32 = vsub.f32 %v3644_v63, %v979_v13 }
  0x69   :  { %806 = vmatpush.msrb.mxu3 %v3484_v30  ;;  %927 = vmatpush.msra.mxu2 %v3627_v51  ;;  %v3671_v7 = vsub.f32 %v565_v27, %v3660_v36  ;;  %v992_v23 = vsub.f32 %v3663_v40, %v991_v61  ;;  %v3743_v27 = vsub.f32 %v551_v16, %v3731_v52 }
  0x6a   :  { %906 = vmatpush.msra.mxu1 %v3445_v5  ;;  %861 = vmatpush.msra.mxu0 %v686_v3  ;;  %v985_v5 = vand.u32 4294901760, %v3654_v25  ;;  %v981_v54 = vand.u32 4294901760, %v980_v32  ;;  %v547_v32 = vld [vmem:[#allocation7 + $0x110] sm:$0xff] }
  0x6b   :  { %808 = vmatpush.msrb.mxu3 %v3495_v38  ;;  %929 = vmatpush.msra.mxu2 %v3631_v55  ;;  %v997_v3 = vand.u32 4294901760, %v3671_v7  ;;  %v993_v35 = vand.u32 4294901760, %v992_v23 }
  0x6c   :  { %908 = vmatpush.msra.mxu1 %v3458_v9  ;;  %865 = vmatpush.msra.mxu0 %v692_v4  ;;  %v3668_v9 = vand.u32 4294901760, %v563_v44  ;;  %v986_v8 = vsub.f32 %v3654_v25, %v985_v5 }
  0x6d   :  { %810 = vmatpush.msrb.mxu3 %v3507_v41  ;;  %931 = vmatpush.msra.mxu2 %v3641_v62  ;;  %v998_v19 = vsub.f32 %v3671_v7, %v997_v3 }
  0x6e   :  { %910 = vmatpush.msra.mxu1 %v3468_v14  ;;  %869 = vmatpush.msra.mxu0 %v698_v42  ;;  %v561_v14 = vld [vmem:[#allocation7 + $0x180] sm:$0xff]  ;;  %v987_v4 = vand.u32 4294901760, %v986_v8  ;;  %v3748_v8 = vand.u32 4294901760, %v547_v32 }
  0x6f   :  { %970 = vmatpush.msra.mxu3 %v969_v10  ;;  %933 = vmatpush.msra.mxu2 %v3651_v24  ;;  %v557_v42 = vld [vmem:[#allocation7 + $0x160] sm:$0xff]  ;;  %v999_v43 = vand.u32 4294901760, %v998_v19 }
  0x70   :  { %912 = vmatpush.msra.mxu1 %v3479_v26  ;;  %873 = vmatpush.msra.mxu0 %v704_v57  ;;  %v3681_v26 = vand.u32 4294901760, %v561_v14  ;;  %v3700_v49 = vand.u32 4294901760, %v557_v42  ;;  %v555_v57 = vld [vmem:[#allocation7 + $0x150] sm:$0xff] }
  0x71   :  { %976 = vmatpush.msra.mxu3 %v975_v31  ;;  %935 = vmatpush.msra.mxu2 %v3660_v36  ;;  %v3708_v20 = vand.u32 4294901760, %v555_v57  ;;  %v1033_v31 = vand.u32 4294901760, %v3734_v58 }
  0x72   :  { %914 = vmatpush.msra.mxu1 %v3484_v30  ;;  %877 = vmatpush.msra.mxu0 %v710_v1  ;;  %v3684_v30 = vsub.f32 %v563_v44, %v3668_v9  ;;  %v3694_v34 = vsub.f32 %v561_v14, %v3681_v26  ;;  %v3711_v1 = vsub.f32 %v557_v42, %v3700_v49 }
  0x73   :  { %982 = vmatpush.msra.mxu3 %v981_v54  ;;  %937 = vmatpush.msra.mxu2 %v3668_v9  ;;  %v3724_v39 = vsub.f32 %v555_v57, %v3708_v20  ;;  %v5110_v54 = vand.u32 4294901760, %v3743_v27  ;;  %v3751_v14 = vsub.f32 %v549_v59, %v3740_v12  ;;  %v1034_v23 = vsub.f32 %v3734_v58, %v1033_v31  ;;  %v131_v59 = vld [vmem:[#allocation6] sm:$0x3] }
  0x74   :  { %916 = vmatpush.msra.mxu1 %v3495_v38  ;;  %881 = vmatpush.msra.mxu0 %v716_v18  ;;  %v1003_v37 = vand.u32 4294901760, %v3684_v30  ;;  %v3691_v38 = vand.u32 4294901760, %v559_v28  ;;  %v1009_v11 = vand.u32 4294901760, %v3694_v34  ;;  %v1021_v22 = vand.u32 4294901760, %v3711_v1 }
  0x75   :  { %939 = vmatpush.msra.mxu2 %v3681_v26  ;;  %988 = vmatpush.msra.mxu3 %v987_v4  ;;  %v1027_v48 = vand.u32 4294901760, %v3724_v39  ;;  %v545_v4 = vld [vmem:[#allocation7 + $0x100] sm:$0xff]  ;;  %v3764_v42 = vsub.f32 %v547_v32, %v3748_v8 }
  0x76   :  { %918 = vmatpush.msra.mxu1 %v3507_v41  ;;  %v1004_v45 = vsub.f32 %v3684_v30, %v1003_v37  ;;  %v3703_v41 = vsub.f32 %v559_v28, %v3691_v38  ;;  %v1010_v17 = vsub.f32 %v3694_v34, %v1009_v11  ;;  %v1022_v46 = vsub.f32 %v3711_v1, %v1021_v22 }
  0x77   :  { %941 = vmatpush.msra.mxu2 %v3691_v38  ;;  %994 = vmatpush.msra.mxu3 %v993_v35  ;;  %v1028_v10 = vsub.f32 %v3724_v39, %v1027_v48  ;;  %v1040_v28 = vsub.f32 %v3743_v27, %v5110_v54  ;;  %v5109_v35 = vand.u32 4294901760, %v3751_v14  ;;  %v3761_v19 = vand.u32 4294901760, %v545_v4 }
  0x78   :  { %v1005_v2 = vand.u32 4294901760, %v1004_v45  ;;  %v1015_v6 = vand.u32 4294901760, %v3703_v41  ;;  %v1011_v15 = vand.u32 4294901760, %v1010_v17  ;;  %v1023_v0 = vand.u32 4294901760, %v1022_v46 }
  0x79   :  { %943 = vmatpush.msra.mxu2 %v3700_v49  ;;  %1000 = vmatpush.msra.mxu3 %v999_v43  ;;  %v1029_v44 = vand.u32 4294901760, %v1028_v10  ;;  %v1035_v43 = vand.u32 4294901760, %v1034_v23  ;;  %v1041_v45 = vand.u32 4294901760, %v1040_v28  ;;  %v1046_v57 = vsub.f32 %v3751_v14, %v5109_v35 }
  0x7a   :  { %v1016_v18 = vsub.f32 %v3703_v41, %v1015_v6  ;;  %v3772_v17 = vsub.f32 %v545_v4, %v3761_v19  ;;  %v133_v10 = vperm.slane %v131_v59, 0  ;;  %v134_v54 = vperm.slane %v131_v59, 1 }
  0x7b   :  { %945 = vmatpush.msra.mxu2 %v3708_v20  ;;  %1006 = vmatpush.msra.mxu3 %v1005_v2  ;;  %v5108_v2 = vand.u32 4294901760, %v3764_v42  ;;  %v1047_v21 = vand.u32 4294901760, %v1046_v57 }
  0x7c   :  { %v1017_v29 = vand.u32 4294901760, %v1016_v18 }
  0x7d   :  { %947 = vmatpush.msra.mxu2 %v3721_v33  ;;  %1012 = vmatpush.msra.mxu3 %v1011_v15  ;;  %v1052_v18 = vsub.f32 %v3764_v42, %v5108_v2  ;;  %v5111_v15 = vand.u32 4294901760, %v3772_v17 }
  0x7f   :  { %949 = vmatpush.msra.mxu2 %v3731_v52  ;;  %1018 = vmatpush.msra.mxu3 %v1017_v29  ;;  %v1053_v16 = vand.u32 4294901760, %v1052_v18  ;;  %v1058_v29 = vsub.f32 %v3772_v17, %v5111_v15 }
  0x81   :  { %951 = vmatpush.msra.mxu2 %v3740_v12  ;;  %1024 = vmatpush.msra.mxu3 %v1023_v0  ;;  %v1059_v46 = vand.u32 4294901760, %v1058_v29 }
  0x83   :  { %953 = vmatpush.msra.mxu2 %v3748_v8  ;;  %1030 = vmatpush.msra.mxu3 %v1029_v44 }
  0x85   :  { %955 = vmatpush.msra.mxu2 %v3761_v19  ;;  %1036 = vmatpush.msra.mxu3 %v1035_v43 }
  0x87   :  { %1042 = vmatpush.msra.mxu3 %v1041_v45 }
  0x89   :  { %1048 = vmatpush.msra.mxu3 %v1047_v21 }
  0x8b   :  { %1054 = vmatpush.msra.mxu3 %v1053_v16 }
  0x8d   :  { %1060 = vmatpush.msra.mxu3 %v1059_v46 }
  0xab   :  { %v167_v0 = vpop.f32.mrf.mxu2 }
  0xac   :  { %v168_v44 = vadd.f32 %v167_v0, %v133_v10  ;;  %v423_v10 = vpop.f32.mrf.mxu0 }
  0xb1   :  { %v208_v32 = vpop.f32.mrf.mxu3 }
  0xb2   :  { %v209_v4 = vadd.f32 %v208_v32, %v168_v44 }
  0xb3   :  { %v238_v23 = vpop.f32.mrf.mxu2 }
  0xb4   :  { %v239_v43 = vadd.f32 %v238_v23, %v209_v4 }
  0xb9   :  { %v265_v28 = vpop.f32.mrf.mxu3 }
  0xba   :  { %v266_v57 = vadd.f32 %v265_v28, %v239_v43 }
  0xbb   :  { %v298_v45 = vpop.f32.mrf.mxu2 }
  0xbc   :  { %v299_v18 = vadd.f32 %v298_v45, %v266_v57  ;;  %v528_v45 = vld [vmem:[#allocation7 + $0x78] sm:$0xff] }
  0xc1   :  { %v323_v2 = vpop.f32.mrf.mxu3 }
  0xc2   :  { %v324_v35 = vadd.f32 %v323_v2, %v299_v18 }
  0xc3   :  { %v352_v21 = vpop.f32.mrf.mxu2 }
  0xc4   :  { %v511_v15 = vmax.f32 %v324_v35, 0.0  ;;  %v353_v16 = vadd.f32 %v352_v21, %v134_v54  ;;  %v450_v54 = vpop.f32.mrf.mxu1  ;;  %v5142_v21 = vand.u32 4294901760, %v3751_v14 }
  0xc6   :  { %v3781_v29 = vand.u32 4294901760, %v511_v15 }
  0xc8   :  { %v3784_v46 = vsub.f32 %v511_v15, %v3781_v29  ;;  %721 = vmatmul.f32.vlgmr.msrb.gmra.mxu1 %v3781_v29 }
  0xc9   :  { %1121 = vmatpush.msrb.mxu1 %v3621_v47  ;;  %v393_v0 = vpop.f32.mrf.mxu3 }
  0xca   :  { %v394_v32 = vadd.f32 %v393_v0, %v353_v16  ;;  %775 = vmatmul.f32.vlgmr.msrb.gmra.mxu2 %v3784_v46  ;;  %v3790_v2 = vand.u32 4294901760, %v3784_v46 }
  0xcb   :  { %1123 = vmatpush.msrb.mxu1 %v3627_v51  ;;  %1162 = vmatpush.msrb.mxu2 %v967_v53  ;;  %v483_v59 = vpop.f32.mrf.mxu2 }
  0xcc   :  { %v424_v35 = vadd.f32 %v423_v10, %v394_v32  ;;  %814 = vmatmul.f32.vlgmr.msrb.gmra.mxu3 %v3790_v2  ;;  %v618_v15 = vsub.f32 %v3784_v46, %v3790_v2  ;;  %v3933_v32 = vand.u32 4294901760, %v528_v45 }
  0xcd   :  { %1125 = vmatpush.msrb.mxu1 %v3631_v55  ;;  %1166 = vmatpush.msrb.mxu2 %v973_v60 }
  0xce   :  { %1229 = vmatpush.msrb.mxu3 %v3621_v47  ;;  %v451_v44 = vadd.f32 %v450_v54, %v424_v35  ;;  %v3802_v23 = vand.u32 4294901760, %v618_v15  ;;  %v5143_v54 = vand.u32 4294901760, %v3764_v42 }
  0xcf   :  { %1127 = vmatpush.msrb.mxu1 %v3641_v62  ;;  %1170 = vmatpush.msrb.mxu2 %v979_v13 }
  0xd0   :  { %1231 = vmatpush.msrb.mxu3 %v3627_v51  ;;  %v484_v53 = vadd.f32 %v483_v59, %v451_v44  ;;  %620 = vmatmul.f32.vlgmr.msrb.gmra.mxu0 %v3802_v23  ;;  %v524_v59 = vld [vmem:[#allocation7 + $0x58] sm:$0xff] }
  0xd1   :  { %920 = vmatmul.f32.vlgmr.msra.gmra.mxu1 %v3781_v29  ;;  %1068 = vmatpush.msrb.mxu0 %v3625_v50  ;;  %v508_v60 = vpop.f32.mrf.mxu3  ;;  %v544_v50 = vld [vmem:[#allocation7 + $0xf8] sm:$0xff] }
  0xd2   :  { %1129 = vmatpush.msrb.mxu1 %v3651_v24  ;;  %1174 = vmatpush.msrb.mxu2 %v985_v5  ;;  %v509_v47 = vadd.f32 %v508_v60, %v484_v53  ;;  %v538_v5 = vld [vmem:[#allocation7 + $0xc8] sm:$0xff] }
  0xd3   :  { %1233 = vmatpush.msrb.mxu3 %v3631_v55  ;;  %1071 = vmatpush.msrb.mxu0 %v3634_v56  ;;  %v542_v55 = vld [vmem:[#allocation7 + $0xe8] sm:$0xff] }
  0xd4   :  { %v512_v13 = vmax.f32 %v509_v47, 0.0  ;;  %1131 = vmatpush.msrb.mxu1 %v3660_v36  ;;  %1178 = vmatpush.msrb.mxu2 %v991_v61 }
  0xd5   :  { %1235 = vmatpush.msrb.mxu3 %v3641_v62  ;;  %1074 = vmatpush.msrb.mxu0 %v3644_v63  ;;  %v3834_v62 = vand.u32 4294901760, %v544_v50  ;;  %v540_v63 = vld [vmem:[#allocation7 + $0xd8] sm:$0xff] }
  0xd6   :  { %v3821_v51 = vand.u32 4294901760, %v512_v13  ;;  %1133 = vmatpush.msrb.mxu1 %v3668_v9  ;;  %1182 = vmatpush.msrb.mxu2 %v997_v3  ;;  %v536_v3 = vld [vmem:[#allocation7 + $0xb8] sm:$0xff] }
  0xd7   :  { %1237 = vmatpush.msrb.mxu3 %v3651_v24  ;;  %1077 = vmatpush.msrb.mxu0 %v3654_v25  ;;  %v3843_v25 = vand.u32 4294901760, %v542_v55  ;;  %v3853_v61 = vsub.f32 %v544_v50, %v3834_v62  ;;  %v3960_v50 = vand.u32 4294901760, %v524_v59 }
  0xd8   :  { %v3829_v56 = vsub.f32 %v512_v13, %v3821_v51  ;;  %1135 = vmatpush.msrb.mxu1 %v3681_v26  ;;  %1186 = vmatpush.msrb.mxu2 %v1003_v37  ;;  %v3867_v37 = vand.u32 4294901760, %v538_v5  ;;  %v522_v13 = vld [vmem:[#allocation7 + $0x48] sm:$0xff] }
  0xd9   :  { %1239 = vmatpush.msrb.mxu3 %v3660_v36  ;;  %883 = vmatmul.f32.vlgmr.msra.gmra.mxu0 %v3781_v29 }
  0xda   :  { %5139 = vst [vmem:[#allocation16_spill] sm:$0xff] %v3829_v56  ;;  %v3839_v24 = vand.u32 4294901760, %v3829_v56  ;;  %1080 = vmatpush.msrb.mxu0 %v3663_v40  ;;  %1137 = vmatpush.msrb.mxu1 %v3691_v38  ;;  %v3855_v40 = vand.u32 4294901760, %v540_v63 }
  0xdb   :  { %1190 = vmatpush.msrb.mxu2 %v1009_v11  ;;  %1241 = vmatpush.msrb.mxu3 %v3668_v9  ;;  %v3878_v11 = vand.u32 4294901760, %v536_v3 }
  0xdc   :  { %5140 = vst [vmem:[#allocation17_spill] sm:$0xff] %v3839_v24  ;;  %1083 = vmatpush.msrb.mxu0 %v3671_v7  ;;  %1139 = vmatpush.msrb.mxu1 %v3700_v49  ;;  %v959_v36 = vsub.f32 %v3829_v56, %v3839_v24  ;;  %v3865_v7 = vsub.f32 %v542_v55, %v3843_v25 }
  0xdd   :  { %1194 = vmatpush.msrb.mxu2 %v1015_v6  ;;  %1243 = vmatpush.msrb.mxu3 %v3681_v26  ;;  %v5128_v26 = vand.u32 4294901760, %v3853_v61  ;;  %v534_v6 = vld [vmem:[#allocation7 + $0xa8] sm:$0xff]  ;;  %v3901_v28 = vsub.f32 %v536_v3, %v3878_v11  ;;  %v3972_v3 = vand.u32 4294901760, %v522_v13 }
  0xde   :  { %1086 = vmatpush.msrb.mxu0 %v3684_v30  ;;  %1141 = vmatpush.msrb.mxu1 %v3708_v20  ;;  %v3862_v9 = vand.u32 4294901760, %v959_v36  ;;  %v3876_v30 = vsub.f32 %v540_v63, %v3855_v40  ;;  %v3892_v4 = vand.u32 4294901760, %v534_v6 }
  0xdf   :  { %1198 = vmatpush.msrb.mxu2 %v1021_v22  ;;  %1245 = vmatpush.msrb.mxu3 %v3691_v38  ;;  %v532_v22 = vld [vmem:[#allocation7 + $0x98] sm:$0xff]  ;;  %v5127_v38 = vand.u32 4294901760, %v3865_v7  ;;  %v5123_v0 = vand.u32 4294901760, %v3901_v28 }
  0xe0   :  { %1089 = vmatpush.msrb.mxu0 %v3694_v34  ;;  %1143 = vmatpush.msrb.mxu1 %v3721_v33  ;;  %v3887_v34 = vsub.f32 %v538_v5, %v3867_v37  ;;  %v3903_v43 = vand.u32 4294901760, %v532_v22  ;;  %v3919_v18 = vsub.f32 %v534_v6, %v3892_v4  ;;  %v520_v5 = vld [vmem:[#allocation7 + $0x38] sm:$0xff] }
  0xe1   :  { %1202 = vmatpush.msrb.mxu2 %v1027_v48  ;;  %1247 = vmatpush.msrb.mxu3 %v3700_v49  ;;  %v530_v48 = vld [vmem:[#allocation7 + $0x88] sm:$0xff]  ;;  %v1309_v49 = vsub.f32 %v3853_v61, %v5128_v26  ;;  %v1333_v60 = vsub.f32 %v3901_v28, %v5123_v0 }
  0xe2   :  { %961 = vmatmul.f32.vlgmr.msra.gmra.mxu2 %v3862_v9  ;;  %1092 = vmatpush.msrb.mxu0 %v3703_v41  ;;  %v5125_v41 = vand.u32 4294901760, %v3876_v30  ;;  %v3914_v57 = vand.u32 4294901760, %v530_v48  ;;  %v3929_v10 = vsub.f32 %v532_v22, %v3903_v43  ;;  %v562_v0 = vld [vmem:[#allocation7 + $0x188] sm:$0xff] }
  0xe3   :  { %1145 = vmatpush.msrb.mxu1 %v3731_v52  ;;  %1206 = vmatpush.msrb.mxu2 %v1033_v31  ;;  %v5141_v31 = vand.u32 4294901760, %v3743_v27  ;;  %v1334_v6 = vand.u32 4294901760, %v1333_v60 }
  0xe4   :  { %1249 = vmatpush.msrb.mxu3 %v3708_v20  ;;  %1095 = vmatpush.msrb.mxu0 %v3711_v1  ;;  %v1315_v20 = vsub.f32 %v3865_v7, %v5127_v38  ;;  %v5124_v1 = vand.u32 4294901760, %v3887_v34  ;;  %v1321_v16 = vsub.f32 %v3876_v30, %v5125_v41  ;;  %v3942_v15 = vsub.f32 %v530_v48, %v3914_v57 }
  0xe5   :  { %1062 = vmatmul.f32.vlgmr.msra.gmra.mxu3 %v3821_v51  ;;  %1147 = vmatpush.msrb.mxu1 %v3740_v12  ;;  %v5121_v47 = vand.u32 4294901760, %v3929_v10  ;;  %v3982_v48 = vsub.f32 %v524_v59, %v3960_v50  ;;  %v4128_v38 = vand.u32 4294901760, %v562_v0 }
  0xe6   :  { %1210 = vmatpush.msrb.mxu2 %v5141_v31  ;;  %1251 = vmatpush.msrb.mxu3 %v3721_v33  ;;  %v1310_v33 = vand.u32 4294901760, %v1309_v49  ;;  %v1327_v35 = vsub.f32 %v3887_v34, %v5124_v1  ;;  %v1322_v53 = vand.u32 4294901760, %v1321_v16  ;;  %v5120_v63 = vand.u32 4294901760, %v3942_v15  ;;  %v556_v1 = vld [vmem:[#allocation7 + $0x158] sm:$0xff] }
  0xe7   :  { %1098 = vmatpush.msrb.mxu0 %v3724_v39  ;;  %1149 = vmatpush.msrb.mxu1 %v3748_v8  ;;  %v526_v39 = vld [vmem:[#allocation7 + $0x68] sm:$0xff]  ;;  %v1345_v22 = vsub.f32 %v3929_v10, %v5121_v47  ;;  %v3984_v49 = vand.u32 4294901760, %v520_v5 }
  0xe8   :  { %1214 = vmatpush.msrb.mxu2 %v5142_v21  ;;  %1253 = vmatpush.msrb.mxu3 %v3731_v52  ;;  %v1316_v52 = vand.u32 4294901760, %v1315_v20  ;;  %v3947_v44 = vand.u32 4294901760, %v526_v39  ;;  %v1328_v55 = vand.u32 4294901760, %v1327_v35  ;;  %v1351_v31 = vsub.f32 %v3942_v15, %v5120_v63  ;;  %v516_v20 = vld [vmem:[#allocation7 + $0x18] sm:$0xff] }
  0xe9   :  { %1101 = vmatpush.msrb.mxu0 %v3734_v58  ;;  %1151 = vmatpush.msrb.mxu1 %v3761_v19  ;;  %v5122_v58 = vand.u32 4294901760, %v3919_v18  ;;  %v4006_v35 = vsub.f32 %v520_v5, %v3984_v49  ;;  %v4008_v59 = vand.u32 4294901760, %v516_v20 }
  0xea   :  { %1218 = vmatpush.msrb.mxu2 %v5143_v54  ;;  %1255 = vmatpush.msrb.mxu3 %v3740_v12  ;;  %v5144_v12 = vand.u32 4294901760, %v3772_v17  ;;  %v3970_v36 = vsub.f32 %v526_v39, %v3947_v44  ;;  %v514_v39 = vld [vmem:[#allocation7 + $0x8] sm:$0xff] }
  0xeb   :  { %1155 = vmatmul.f32.vlgmr.msrb.gmra.mxu1 %v3839_v24  ;;  %1104 = vmatpush.msrb.mxu0 %v3743_v27  ;;  %v3958_v27 = vsub.f32 %v528_v45, %v3933_v32 }
  0xec   :  { %1311 = vmatpush.msra.mxu1 %v1310_v33  ;;  %1222 = vmatpush.msrb.mxu2 %v5144_v12  ;;  %v5116_v21 = vand.u32 4294901760, %v3970_v36  ;;  %v3994_v33 = vsub.f32 %v522_v13, %v3972_v3  ;;  %v4020_v13 = vand.u32 4294901760, %v514_v39 }
  0xed   :  { %1257 = vmatpush.msrb.mxu3 %v3748_v8  ;;  %1224 = vmatmul.f32.vlgmr.msrb.gmra.mxu2 %v3821_v51  ;;  %v1339_v8 = vsub.f32 %v3919_v18, %v5122_v58  ;;  %v564_v58 = vld [vmem:[#allocation7 + $0x198] sm:$0xff] }
  0xee   :  { %1317 = vmatpush.msra.mxu1 %v1316_v52  ;;  %1409 = vmatpush.msra.mxu2 %v3853_v61  ;;  %v5114_v52 = vand.u32 4294901760, %v3982_v48  ;;  %v1363_v12 = vsub.f32 %v3970_v36, %v5116_v21  ;;  %v570_v21 = vld [vmem:[#allocation7 + $0x1c8] sm:$0xff]  ;;  %v4115_v41 = vand.u32 4294901760, %v564_v58 }
  0xef   :  { %1107 = vmatpush.msrb.mxu0 %v3751_v14  ;;  %1259 = vmatpush.msrb.mxu3 %v3761_v19  ;;  %v518_v14 = vld [vmem:[#allocation7 + $0x28] sm:$0xff]  ;;  %v5118_v19 = vand.u32 4294901760, %v3958_v27  ;;  %v1340_v45 = vand.u32 4294901760, %v1339_v8  ;;  %v5113_v8 = vand.u32 4294901760, %v4006_v35 }
  0xf0   :  { %1261 = vmatmul.f32.vlgmr.msrb.gmra.mxu3 %v3821_v51  ;;  %1323 = vmatpush.msra.mxu1 %v1322_v53  ;;  %v3996_v16 = vand.u32 4294901760, %v518_v14  ;;  %v5112_v53 = vand.u32 4294901760, %v3994_v33  ;;  %v1369_v5 = vsub.f32 %v3982_v48, %v5114_v52  ;;  %v572_v52 = vld [vmem:[#allocation7 + $0x1d8] sm:$0xff] }
  0xf1   :  { %1412 = vmatpush.msra.mxu2 %v3865_v7  ;;  %1462 = vmatpush.msra.mxu3 %v3834_v62  ;;  %v1357_v54 = vsub.f32 %v3958_v27, %v5118_v19  ;;  %v568_v19 = vld [vmem:[#allocation7 + $0x1b8] sm:$0xff] }
  0xf2   :  { %1110 = vmatpush.msrb.mxu0 %v3764_v42  ;;  %1329 = vmatpush.msra.mxu1 %v1328_v55  ;;  %v1346_v42 = vand.u32 4294901760, %v1345_v22  ;;  %v4018_v60 = vsub.f32 %v518_v14, %v3996_v16  ;;  %v1364_v22 = vand.u32 4294901760, %v1363_v12  ;;  %v1375_v14 = vsub.f32 %v3994_v33, %v5112_v53 }
  0xf3   :  { %1415 = vmatpush.msra.mxu2 %v3876_v30  ;;  %1464 = vmatpush.msra.mxu3 %v3843_v25  ;;  %v1358_v55 = vand.u32 4294901760, %v1357_v54  ;;  %v1381_v54 = vsub.f32 %v4006_v35, %v5113_v8 }
  0xf4   :  { %1113 = vmatpush.msrb.mxu0 %v3772_v17  ;;  %1335 = vmatpush.msra.mxu1 %v1334_v6  ;;  %v1352_v17 = vand.u32 4294901760, %v1351_v31  ;;  %v4030_v6 = vsub.f32 %v516_v20, %v4008_v59  ;;  %v5115_v31 = vand.u32 4294901760, %v4018_v60  ;;  %v576_v20 = vld [vmem:[#allocation7 + $0x1f8] sm:$0xff]  ;;  %v1376_v12 = vand.u32 4294901760, %v1375_v14 }
  0xf5   :  { %1116 = vmatmul.f32.vlgmr.msrb.gmra.mxu0 %v3829_v56  ;;  %1418 = vmatpush.msra.mxu2 %v3887_v34  ;;  %v4056_v53 = vand.u32 4294901760, %v576_v20  ;;  %v1382_v8 = vand.u32 4294901760, %v1381_v54 }
  0xf6   :  { %1266 = vmatpush.msra.mxu0 %v3834_v62  ;;  %1466 = vmatpush.msra.mxu3 %v3855_v40 }
  0xf7   :  { %1341 = vmatpush.msra.mxu1 %v1340_v45  ;;  %1421 = vmatpush.msra.mxu2 %v3901_v28  ;;  %v4040_v45 = vsub.f32 %v514_v39, %v4020_v13  ;;  %v574_v39 = vld [vmem:[#allocation7 + $0x1e8] sm:$0xff]  ;;  %v4073_v54 = vsub.f32 %v576_v20, %v4056_v53  ;;  %v4085_v20 = vand.u32 4294901760, %v570_v21 }
  0xf8   :  { %1268 = vmatpush.msra.mxu0 %v3843_v25  ;;  %1468 = vmatpush.msra.mxu3 %v3867_v37  ;;  %v4064_v14 = vand.u32 4294901760, %v574_v39 }
  0xf9   :  { %1347 = vmatpush.msra.mxu1 %v1346_v42  ;;  %1424 = vmatpush.msra.mxu2 %v3919_v18  ;;  %5145 = vst [vmem:[#allocation18_spill] sm:$0xff] %v4040_v45  ;;  %v1370_v42 = vand.u32 4294901760, %v1369_v5  ;;  %v5119_v5 = vand.u32 4294901760, %v4040_v45  ;;  %v5126_v47 = vand.u32 4294901760, %v4073_v54 }
  0xfa   :  { %1270 = vmatpush.msra.mxu0 %v3855_v40  ;;  %1470 = vmatpush.msra.mxu3 %v3878_v11 }
  0xfb   :  { %1353 = vmatpush.msra.mxu1 %v1352_v17  ;;  %1427 = vmatpush.msra.mxu2 %v3929_v10  ;;  %v5117_v17 = vand.u32 4294901760, %v4030_v6 }
  0xfc   :  { %1272 = vmatpush.msra.mxu0 %v3867_v37  ;;  %1472 = vmatpush.msra.mxu3 %v3892_v4 }
  0xfd   :  { %1359 = vmatpush.msra.mxu1 %v1358_v55  ;;  %1430 = vmatpush.msra.mxu2 %v3942_v15  ;;  %v1387_v55 = vsub.f32 %v4018_v60, %v5115_v31 }
  0xfe   :  { %1274 = vmatpush.msra.mxu0 %v3878_v11  ;;  %1474 = vmatpush.msra.mxu3 %v3903_v43 }
  0xff   :  { %1365 = vmatpush.msra.mxu1 %v1364_v22  ;;  %1433 = vmatpush.msra.mxu2 %v3958_v27  ;;  %v1393_v22 = vsub.f32 %v4030_v6, %v5117_v17  ;;  %v1388_v31 = vand.u32 4294901760, %v1387_v55  ;;  %v4077_v17 = vand.u32 4294901760, %v572_v52  ;;  %v4081_v55 = vsub.f32 %v574_v39, %v4064_v14 }
 0x100   :  { %1276 = vmatpush.msra.mxu0 %v3892_v4  ;;  %1476 = vmatpush.msra.mxu3 %v3914_v57 }
 0x101   :  { %1371 = vmatpush.msra.mxu1 %v1370_v42  ;;  %1436 = vmatpush.msra.mxu2 %v3970_v36  ;;  %v1399_v42 = vsub.f32 %v4040_v45, %v5119_v5  ;;  %v566_v5 = vld [vmem:[#allocation7 + $0x1a8] sm:$0xff]  ;;  %v4094_v39 = vsub.f32 %v572_v52, %v4077_v17  ;;  %v1650_v52 = vsub.f32 %v4073_v54, %v5126_v47 }
 0x102   :  { %1278 = vmatpush.msra.mxu0 %v3903_v43  ;;  %1478 = vmatpush.msra.mxu3 %v3933_v32  ;;  %v4139_v47 = vsub.f32 %v564_v58, %v4115_v41  ;;  %v4152_v58 = vsub.f32 %v562_v0, %v4128_v38 }
 0x103   :  { %1377 = vmatpush.msra.mxu1 %v1376_v12  ;;  %1439 = vmatpush.msra.mxu2 %v3982_v48  ;;  %v1394_v12 = vand.u32 4294901760, %v1393_v22  ;;  %v1400_v63 = vand.u32 4294901760, %v1399_v42  ;;  %v5129_v22 = vand.u32 4294901760, %v4081_v55  ;;  %v4103_v42 = vsub.f32 %v570_v21, %v4085_v20  ;;  %v560_v21 = vld [vmem:[#allocation7 + $0x178] sm:$0xff] }
 0x104   :  { %1280 = vmatpush.msra.mxu0 %v3914_v57  ;;  %1480 = vmatpush.msra.mxu3 %v3947_v44  ;;  %v1651_v26 = vand.u32 4294901760, %v1650_v52  ;;  %v4141_v56 = vand.u32 4294901760, %v560_v21 }
 0x105   :  { %1383 = vmatpush.msra.mxu1 %v1382_v8  ;;  %1442 = vmatpush.msra.mxu2 %v3994_v33  ;;  %v4089_v8 = vand.u32 4294901760, %v568_v19  ;;  %5146 = vst [vmem:[#allocation19_spill] sm:$0xff] %v4103_v42 }
 0x106   :  { %1282 = vmatpush.msra.mxu0 %v3933_v32  ;;  %1482 = vmatpush.msra.mxu3 %v3960_v50  ;;  %v4164_v0 = vsub.f32 %v560_v21, %v4141_v56 }
 0x107   :  { %1389 = vmatpush.msra.mxu1 %v1388_v31  ;;  %1445 = vmatpush.msra.mxu2 %v4006_v35  ;;  %v4098_v31 = vand.u32 4294901760, %v566_v5 }
 0x108   :  { %1284 = vmatpush.msra.mxu0 %v3947_v44  ;;  %1484 = vmatpush.msra.mxu3 %v3972_v3 }
 0x109   :  { %1395 = vmatpush.msra.mxu1 %v1394_v12  ;;  %1448 = vmatpush.msra.mxu2 %v4018_v60  ;;  %v4110_v12 = vsub.f32 %v568_v19, %v4089_v8  ;;  %v4123_v19 = vsub.f32 %v566_v5, %v4098_v31 }
 0x10a   :  { %1286 = vmatpush.msra.mxu0 %v3960_v50  ;;  %1486 = vmatpush.msra.mxu3 %v3984_v49 }
 0x10b   :  { %1401 = vmatpush.msra.mxu1 %v1400_v63  ;;  %1451 = vmatpush.msra.mxu2 %v4030_v6  ;;  %5147 = vst [vmem:[#allocation20_spill] sm:$0xff] %v4110_v12  ;;  %v1656_v63 = vsub.f32 %v4081_v55, %v5129_v22  ;;  %v558_v22 = vld [vmem:[#allocation7 + $0x168] sm:$0xff] }
 0x10c   :  { %1288 = vmatpush.msra.mxu0 %v3972_v3  ;;  %1488 = vmatpush.msra.mxu3 %v3996_v16  ;;  %5148 = vst [vmem:[#allocation21_spill] sm:$0xff] %v4123_v19  ;;  %v4154_v24 = vand.u32 4294901760, %v558_v22 }
 0x10d   :  { %1403 = vmatmul.f32.vlgmr.msra.gmra.mxu1 %v3781_v29  ;;  %1454 = vmatpush.msra.mxu2 %v4040_v45  ;;  %v554_v45 = vld [vmem:[#allocation7 + $0x148] sm:$0xff] }
 0x10e   :  { %1570 = vmatpush.msrb.mxu1 %v3834_v62  ;;  %1290 = vmatpush.msra.mxu0 %v3984_v49  ;;  %v5149_v62 = vand.u32 4294901760, %v4094_v39  ;;  %v4176_v21 = vsub.f32 %v558_v22, %v4154_v24 }
 0x10f   :  { %1490 = vmatpush.msra.mxu3 %v4008_v59  ;;  %1457 = vmatmul.f32.vlgmr.msra.gmra.mxu2 %v3784_v46  ;;  %v1657_v46 = vand.u32 4294901760, %v1656_v63  ;;  %v5151_v63 = vand.u32 4294901760, %v4110_v12 }
 0x110   :  { %1572 = vmatpush.msrb.mxu1 %v3843_v25  ;;  %1607 = vmatpush.msrb.mxu2 %v4056_v53  ;;  %v1662_v5 = vsub.f32 %v4094_v39, %v5149_v62  ;;  %v5150_v25 = vand.u32 4294901760, %v4103_v42 }
 0x111   :  { %1292 = vmatpush.msra.mxu0 %v3996_v16  ;;  %1492 = vmatpush.msra.mxu3 %v4020_v13  ;;  %v1674_v52 = vsub.f32 %v4110_v12, %v5151_v63  ;;  %v552_v12 = vld [vmem:[#allocation7 + $0x138] sm:$0xff] }
 0x112   :  { %1496 = vmatmul.f32.vlgmr.msra.gmra.mxu3 %v3790_v2  ;;  %1574 = vmatpush.msrb.mxu1 %v3855_v40  ;;  %v1668_v62 = vsub.f32 %v4103_v42, %v5150_v25  ;;  %v1663_v2 = vand.u32 4294901760, %v1662_v5  ;;  %v4166_v25 = vand.u32 4294901760, %v556_v1  ;;  %v4178_v40 = vand.u32 4294901760, %v554_v45  ;;  %v550_v42 = vld [vmem:[#allocation7 + $0x128] sm:$0xff]  ;;  %v548_v5 = vld [vmem:[#allocation7 + $0x118] sm:$0xff] }
 0x113   :  { %1609 = vmatpush.msrb.mxu2 %v4064_v14  ;;  %1652 = vmatpush.msrb.mxu3 %v1651_v26  ;;  %v5152_v26 = vand.u32 4294901760, %v4123_v19 }
 0x114   :  { %1294 = vmatpush.msra.mxu0 %v4008_v59  ;;  %1576 = vmatpush.msrb.mxu1 %v3867_v37  ;;  %v1669_v37 = vand.u32 4294901760, %v1668_v62  ;;  %v4189_v22 = vsub.f32 %v556_v1, %v4166_v25  ;;  %v4202_v1 = vsub.f32 %v554_v45, %v4178_v40 }
 0x115   :  { %1611 = vmatpush.msrb.mxu2 %v4077_v17  ;;  %1658 = vmatpush.msrb.mxu3 %v1657_v46  ;;  %v1680_v63 = vsub.f32 %v4123_v19, %v5152_v26  ;;  %v1675_v46 = vand.u32 4294901760, %v1674_v52  ;;  %v5153_v26 = vand.u32 4294901760, %v3853_v61  ;;  %v4191_v19 = vand.u32 4294901760, %v552_v12 }
 0x116   :  { %1296 = vmatpush.msra.mxu0 %v4020_v13  ;;  %1578 = vmatpush.msrb.mxu1 %v3878_v11  ;;  %v5154_v11 = vand.u32 4294901760, %v4139_v47  ;;  %v5155_v61 = vand.u32 4294901760, %v3865_v7  ;;  %v5156_v52 = vand.u32 4294901760, %v4152_v58  ;;  %v5157_v7 = vand.u32 4294901760, %v3876_v30 }
 0x117   :  { %1302 = vmatmul.f32.vlgmr.msra.gmra.mxu0 %v3802_v23  ;;  %1613 = vmatpush.msrb.mxu2 %v4085_v20  ;;  %v1681_v23 = vand.u32 4294901760, %v1680_v63  ;;  %v5158_v63 = vand.u32 4294901760, %v4164_v0  ;;  %v4215_v45 = vsub.f32 %v552_v12, %v4191_v19  ;;  %v5159_v30 = vand.u32 4294901760, %v3887_v34 }
 0x118   :  { %1503 = vmatpush.msrb.mxu0 %v5153_v26  ;;  %1664 = vmatpush.msrb.mxu3 %v1663_v2  ;;  %v1686_v62 = vsub.f32 %v4139_v47, %v5154_v11  ;;  %v1692_v2 = vsub.f32 %v4152_v58, %v5156_v52  ;;  %v1703_v26 = vand.u32 4294901760, %v4176_v21  ;;  %v4204_v11 = vand.u32 4294901760, %v550_v42  ;;  %v546_v52 = vld [vmem:[#allocation7 + $0x108] sm:$0xff] }
 0x119   :  { %1580 = vmatpush.msrb.mxu1 %v3892_v4  ;;  %1615 = vmatpush.msrb.mxu2 %v4089_v8  ;;  %v5160_v34 = vand.u32 4294901760, %v3901_v28 }
 0x11a   :  { %1507 = vmatpush.msrb.mxu0 %v5155_v61  ;;  %1670 = vmatpush.msrb.mxu3 %v1669_v37  ;;  %v1687_v4 = vand.u32 4294901760, %v1686_v62  ;;  %v1698_v37 = vsub.f32 %v4164_v0, %v5158_v63  ;;  %v1709_v61 = vand.u32 4294901760, %v4189_v22  ;;  %v1704_v62 = vsub.f32 %v4176_v21, %v1703_v26 }
 0x11b   :  { %1582 = vmatpush.msrb.mxu1 %v3903_v43  ;;  %1617 = vmatpush.msrb.mxu2 %v4098_v31  ;;  %v4219_v43 = vand.u32 4294901760, %v548_v5  ;;  %v4228_v12 = vsub.f32 %v550_v42, %v4204_v11  ;;  %v1721_v63 = vand.u32 4294901760, %v4215_v45  ;;  %v5161_v42 = vand.u32 4294901760, %v3919_v18 }
 0x11c   :  { %1511 = vmatpush.msrb.mxu0 %v5157_v7  ;;  %1676 = vmatpush.msrb.mxu3 %v1675_v46  ;;  %v1693_v46 = vand.u32 4294901760, %v1692_v2  ;;  %v1715_v7 = vand.u32 4294901760, %v4202_v1  ;;  %v1710_v2 = vsub.f32 %v4189_v22, %v1709_v61  ;;  %v1705_v28 = vand.u32 4294901760, %v1704_v62 }
 0x11d   :  { %1584 = vmatpush.msrb.mxu1 %v3914_v57  ;;  %1619 = vmatpush.msrb.mxu2 %v4115_v41  ;;  %v4232_v57 = vand.u32 4294901760, %v546_v52 }
 0x11e   :  { %1515 = vmatpush.msrb.mxu0 %v5159_v30  ;;  %1682 = vmatpush.msrb.mxu3 %v1681_v23  ;;  %v1699_v23 = vand.u32 4294901760, %v1698_v37  ;;  %v1727_v37 = vand.u32 4294901760, %v4228_v12  ;;  %v1711_v18 = vand.u32 4294901760, %v1710_v2  ;;  %v1722_v30 = vsub.f32 %v4215_v45, %v1721_v63 }
 0x11f   :  { %1586 = vmatpush.msrb.mxu1 %v3933_v32  ;;  %1621 = vmatpush.msrb.mxu2 %v4128_v38  ;;  %v4243_v32 = vsub.f32 %v548_v5, %v4219_v43  ;;  %v5162_v5 = vand.u32 4294901760, %v3929_v10  ;;  %v5167_v2 = vand.u32 4294901760, %v3994_v33  ;;  %v5170_v33 = vand.u32 4294901760, %v4018_v60  ;;  %v5174_v60 = vld [vmem:[#allocation18_spill] sm:$0xff] }
 0x120   :  { %1519 = vmatpush.msrb.mxu0 %v5160_v34  ;;  %1688 = vmatpush.msrb.mxu3 %v1687_v4  ;;  %v1716_v4 = vsub.f32 %v4202_v1, %v1715_v7  ;;  %v1728_v10 = vsub.f32 %v4228_v12, %v1727_v37  ;;  %v1723_v34 = vand.u32 4294901760, %v1722_v30  ;;  %v1963_v30 = vld [vmem:[#allocation9 + $0x70] sm:$0xff] }
 0x121   :  { %1588 = vmatpush.msrb.mxu1 %v3947_v44  ;;  %1623 = vmatpush.msrb.mxu2 %v4141_v56  ;;  %v4254_v44 = vsub.f32 %v546_v52, %v4232_v57 }
 0x122   :  { %1523 = vmatpush.msrb.mxu0 %v5161_v42  ;;  %1694 = vmatpush.msrb.mxu3 %v1693_v46  ;;  %v5163_v46 = vand.u32 4294901760, %v3942_v15  ;;  %v1717_v52 = vand.u32 4294901760, %v1716_v4  ;;  %v5171_v42 = vand.u32 4294901760, %v4081_v55  ;;  %v5176_v4 = vld [vmem:[#allocation19_spill] sm:$0xff] }
 0x123   :  { %1590 = vmatpush.msrb.mxu1 %v3960_v50  ;;  %1625 = vmatpush.msrb.mxu2 %v4154_v24  ;;  %v1733_v50 = vand.u32 4294901760, %v4243_v32  ;;  %v1739_v62 = vand.u32 4294901760, %v4254_v44 }
 0x124   :  { %1527 = vmatpush.msrb.mxu0 %v5162_v5  ;;  %1700 = vmatpush.msrb.mxu3 %v1699_v23  ;;  %v5165_v23 = vand.u32 4294901760, %v3970_v36  ;;  %v5177_v5 = vand.u32 4294901760, %v5176_v4 }
 0x125   :  { %1592 = vmatpush.msrb.mxu1 %v3972_v3  ;;  %1627 = vmatpush.msrb.mxu2 %v4166_v25  ;;  %v5164_v3 = vand.u32 4294901760, %v3958_v27  ;;  %v1734_v15 = vsub.f32 %v4243_v32, %v1733_v50  ;;  %v1740_v27 = vsub.f32 %v4254_v44, %v1739_v62 }
 0x126   :  { %1531 = vmatpush.msrb.mxu0 %v5163_v46  ;;  %1706 = vmatpush.msrb.mxu3 %v1705_v28  ;;  %v5175_v28 = vand.u32 4294901760, %v5174_v60 }
 0x127   :  { %1594 = vmatpush.msrb.mxu1 %v3984_v49  ;;  %1629 = vmatpush.msrb.mxu2 %v4178_v40  ;;  %v1729_v49 = vand.u32 4294901760, %v1728_v10  ;;  %v1735_v36 = vand.u32 4294901760, %v1734_v15  ;;  %v1960_v10 = vld [vmem:[#allocation9 + $0x58] sm:$0xff] }
 0x128   :  { %1535 = vmatpush.msrb.mxu0 %v5164_v3  ;;  %1712 = vmatpush.msrb.mxu3 %v1711_v18 }
 0x129   :  { %1596 = vmatpush.msrb.mxu1 %v3996_v16  ;;  %1631 = vmatpush.msrb.mxu2 %v4191_v19  ;;  %v5166_v16 = vand.u32 4294901760, %v3982_v48  ;;  %v5168_v48 = vand.u32 4294901760, %v4006_v35  ;;  %v5173_v35 = vand.u32 4294901760, %v4094_v39 }
 0x12a   :  { %1539 = vmatpush.msrb.mxu0 %v5165_v23  ;;  %1718 = vmatpush.msrb.mxu3 %v1717_v52 }
 0x12b   :  { %1598 = vmatpush.msrb.mxu1 %v4008_v59  ;;  %1633 = vmatpush.msrb.mxu2 %v4204_v11  ;;  %v1741_v59 = vand.u32 4294901760, %v1740_v27  ;;  %v1957_v27 = vld [vmem:[#allocation9 + $0x40] sm:$0xff] }
 0x12c   :  { %1543 = vmatpush.msrb.mxu0 %v5166_v16  ;;  %1724 = vmatpush.msrb.mxu3 %v1723_v34 }
 0x12d   :  { %1600 = vmatpush.msrb.mxu1 %v4020_v13  ;;  %1635 = vmatpush.msrb.mxu2 %v4219_v43  ;;  %v5169_v13 = vand.u32 4294901760, %v4073_v54 }
 0x12e   :  { %1547 = vmatpush.msrb.mxu0 %v5167_v2  ;;  %1730 = vmatpush.msrb.mxu3 %v1729_v49  ;;  %v1958_v49 = vld [vmem:[#allocation9 + $0x48] sm:$0xff] }
 0x12f   :  { %1602 = vmatmul.f32.vlgmr.msrb.gmra.mxu1 %v3781_v29  ;;  %1637 = vmatpush.msrb.mxu2 %v4232_v57  ;;  %v4386_v16 = vand.u32 4294901760, %v1958_v49 }
 0x130   :  { %1803 = vmatpush.msra.mxu1 %v4056_v53  ;;  %1551 = vmatpush.msrb.mxu0 %v5168_v48 }
 0x131   :  { %1736 = vmatpush.msrb.mxu3 %v1735_v36  ;;  %1643 = vmatmul.f32.vlgmr.msrb.gmra.mxu2 %v3862_v9  ;;  %v5172_v9 = vand.u32 4294901760, %v4030_v6  ;;  %v1956_v36 = vld [vmem:[#allocation9 + $0x38] sm:$0xff] }
 0x132   :  { %1805 = vmatpush.msra.mxu1 %v4064_v14  ;;  %1844 = vmatpush.msra.mxu2 %v5169_v13  ;;  %v4423_v13 = vand.u32 4294901760, %v1956_v36 }
 0x133   :  { %1555 = vmatpush.msrb.mxu0 %v5170_v33  ;;  %1742 = vmatpush.msrb.mxu3 %v1741_v59 }
 0x134   :  { %1744 = vmatmul.f32.vlgmr.msrb.gmra.mxu3 %v3821_v51  ;;  %1807 = vmatpush.msra.mxu1 %v4077_v17 }
 0x135   :  { %1848 = vmatpush.msra.mxu2 %v5171_v42  ;;  %1911 = vmatpush.msra.mxu3 %v4056_v53  ;;  %v5178_v53 = vld [vmem:[#allocation20_spill] sm:$0xff]  ;;  %v4439_v42 = vld [vmem:[%s5102_s4] sm:$0x3] }
 0x136   :  { %1559 = vmatpush.msrb.mxu0 %v5172_v9  ;;  %1809 = vmatpush.msra.mxu1 %v4085_v20  ;;  %v5179_v6 = vand.u32 4294901760, %v5178_v53 }
 0x137   :  { %1852 = vmatpush.msra.mxu2 %v5173_v35  ;;  %1913 = vmatpush.msra.mxu3 %v4064_v14  ;;  %v1964_v14 = vld [vmem:[#allocation9 + $0x78] sm:$0xff]  ;;  %v5185_v35 = vld [vmem:[#allocation17_spill] sm:$0xff] }
 0x138   :  { %1563 = vmatpush.msrb.mxu0 %v5175_v28  ;;  %1811 = vmatpush.msra.mxu1 %v4089_v8 }
 0x139   :  { %1565 = vmatmul.f32.vlgmr.msrb.gmra.mxu0 %v3781_v29  ;;  %1856 = vmatpush.msra.mxu2 %v5177_v5  ;;  %v5180_v29 = vld [vmem:[#allocation21_spill] sm:$0xff] }
 0x13a   :  { %1750 = vmatpush.msra.mxu0 %v4073_v54  ;;  %1915 = vmatpush.msra.mxu3 %v4077_v17  ;;  %v5181_v18 = vand.u32 4294901760, %v5180_v29  ;;  %v4332_v17 = vand.u32 4294901760, %v1964_v14  ;;  %v5182_v54 = vand.u32 4294901760, %v4139_v47 }
 0x13b   :  { %1813 = vmatpush.msra.mxu1 %v4098_v31  ;;  %1860 = vmatpush.msra.mxu2 %v5179_v6  ;;  %v1952_v6 = vld [vmem:[#allocation9 + $0x18] sm:$0xff] }
 0x13c   :  { %1753 = vmatpush.msra.mxu0 %v4081_v55  ;;  %1917 = vmatpush.msra.mxu3 %v4085_v20  ;;  %v1962_v55 = vld [vmem:[#allocation9 + $0x68] sm:$0xff]  ;;  %v4339_v20 = vand.u32 4294901760, %v1963_v30  ;;  %v4347_v46 = vsub.f32 %v1964_v14, %v4332_v17 }
 0x13d   :  { %1815 = vmatpush.msra.mxu1 %v4115_v41  ;;  %1864 = vmatpush.msra.mxu2 %v5181_v18  ;;  %v4349_v52 = vand.u32 4294901760, %v1962_v55 }
 0x13e   :  { %1756 = vmatpush.msra.mxu0 %v4094_v39  ;;  %1919 = vmatpush.msra.mxu3 %v4089_v8  ;;  %v5183_v39 = vand.u32 4294901760, %v4152_v58  ;;  %v1961_v8 = vld [vmem:[#allocation9 + $0x60] sm:$0xff]  ;;  %v4357_v3 = vsub.f32 %v1963_v30, %v4339_v20  ;;  %v2028_v15 = vand.u32 4294901760, %v4347_v46 }
 0x13f   :  { %1817 = vmatpush.msra.mxu1 %v4128_v38  ;;  %1868 = vmatpush.msra.mxu2 %v5182_v54  ;;  %v4359_v34 = vand.u32 4294901760, %v1961_v8  ;;  %v4368_v23 = vsub.f32 %v1962_v55, %v4349_v52 }
 0x140   :  { %1759 = vmatpush.msra.mxu0 %v5176_v4  ;;  %1921 = vmatpush.msra.mxu3 %v4098_v31  ;;  %v5184_v31 = vand.u32 4294901760, %v4164_v0  ;;  %v4453_v4 = vsub.f32 %v1956_v36, %v4423_v13 }
 0x141   :  { %1819 = vmatpush.msra.mxu1 %v4141_v56  ;;  %1872 = vmatpush.msra.mxu2 %v5183_v39 }
 0x142   :  { %1762 = vmatpush.msra.mxu0 %v5178_v53  ;;  %1923 = vmatpush.msra.mxu3 %v4115_v41  ;;  %v1959_v41 = vld [vmem:[#allocation9 + $0x50] sm:$0xff]  ;;  %v2076_v55 = vand.u32 4294901760, %v4453_v4 }
 0x143   :  { %1821 = vmatpush.msra.mxu1 %v4154_v24  ;;  %1876 = vmatpush.msra.mxu2 %v5184_v31 }
 0x144   :  { %1765 = vmatpush.msra.mxu0 %v5180_v29  ;;  %1925 = vmatpush.msra.mxu3 %v4128_v38  ;;  %v4370_v38 = vand.u32 4294901760, %v1960_v10 }
 0x145   :  { %1823 = vmatpush.msra.mxu1 %v4166_v25  ;;  %1880 = vmatpush.msra.mxu2 %v1703_v26  ;;  %v4381_v26 = vand.u32 4294901760, %v1959_v41  ;;  %v722_v36 = vpop.f32.mrf.mxu1 }
 0x146   :  { %1768 = vmatpush.msra.mxu0 %v4139_v47  ;;  %1927 = vmatpush.msra.mxu3 %v4141_v56  ;;  %v2034_v47 = vand.u32 4294901760, %v4357_v3  ;;  %v4379_v56 = vsub.f32 %v1961_v8, %v4359_v34  ;;  %v4480_v8 = vand.u32 4294901760, %v1952_v6 }
 0x147   :  { %1825 = vmatpush.msra.mxu1 %v4178_v40  ;;  %1884 = vmatpush.msra.mxu2 %v1709_v61  ;;  %v4395_v61 = vsub.f32 %v1960_v10, %v4370_v38  ;;  %v4409_v2 = vsub.f32 %v1959_v41, %v4381_v26  ;;  %v1950_v10 = vld [vmem:[#allocation9 + $0x8] sm:$0xff] }
 0x148   :  { %1771 = vmatpush.msra.mxu0 %v4152_v58  ;;  %1929 = vmatpush.msra.mxu3 %v4154_v24  ;;  %v2029_v24 = vsub.f32 %v4347_v46, %v2028_v15  ;;  %v2040_v58 = vand.u32 4294901760, %v4368_v23 }
 0x149   :  { %1827 = vmatpush.msra.mxu1 %v4191_v19  ;;  %1888 = vmatpush.msra.mxu2 %v1715_v7  ;;  %v4400_v7 = vand.u32 4294901760, %v1957_v27  ;;  %v2052_v48 = vand.u32 4294901760, %v4395_v61 }
 0x14a   :  { %1774 = vmatpush.msra.mxu0 %v4164_v0  ;;  %1931 = vmatpush.msra.mxu3 %v4166_v25  ;;  %v2035_v0 = vsub.f32 %v4357_v3, %v2034_v47  ;;  %v2046_v25 = vand.u32 4294901760, %v4379_v56  ;;  %v2041_v59 = vsub.f32 %v4368_v23, %v2040_v58 }
 0x14b   :  { %1829 = vmatpush.msra.mxu1 %v4204_v11  ;;  %1892 = vmatpush.msra.mxu2 %v1721_v63  ;;  %v4415_v63 = vsub.f32 %v1958_v49, %v4386_v16  ;;  %v2053_v28 = vsub.f32 %v4395_v61, %v2052_v48 }
 0x14c   :  { %1777 = vmatpush.msra.mxu0 %v4176_v21  ;;  %1933 = vmatpush.msra.mxu3 %v4178_v40  ;;  %v1955_v21 = vld [vmem:[#allocation9 + $0x30] sm:$0xff]  ;;  %v2030_v40 = vand.u32 4294901760, %v2029_v24  ;;  %v2047_v33 = vsub.f32 %v4379_v56, %v2046_v25  ;;  %v2042_v60 = vand.u32 4294901760, %v2041_v59  ;;  %v1949_v24 = vld [vmem:[#allocation9] sm:$0xff]  ;;  %v4502_v59 = vsub.f32 %v1952_v6, %v4480_v8 }
 0x14d   :  { %1831 = vmatpush.msra.mxu1 %v4219_v43  ;;  %1896 = vmatpush.msra.mxu2 %v1727_v37  ;;  %v4429_v37 = vsub.f32 %v1957_v27, %v4400_v7  ;;  %v4442_v9 = vand.u32 4294901760, %v1955_v21  ;;  %v621_v14 = vpop.f32.mrf.mxu0  ;;  %v2054_v54 = vand.u32 4294901760, %v2053_v28  ;;  %v776_v28 = vpop.f32.mrf.mxu2 }
 0x14e   :  { %1780 = vmatpush.msra.mxu0 %v4189_v22  ;;  %1935 = vmatpush.msra.mxu3 %v4191_v19  ;;  %v1954_v22 = vld [vmem:[#allocation9 + $0x28] sm:$0xff]  ;;  %v2036_v19 = vand.u32 4294901760, %v2035_v0  ;;  %v5186_v0 = vld [vmem:[#allocation16_spill] sm:$0xff] }
 0x14f   :  { %1833 = vmatpush.msra.mxu1 %v4232_v57  ;;  %1900 = vmatpush.msra.mxu2 %v1733_v50  ;;  %v2058_v50 = vand.u32 4294901760, %v4409_v2  ;;  %v4455_v5 = vand.u32 4294901760, %v1954_v22  ;;  %v2070_v53 = vand.u32 4294901760, %v4429_v37  ;;  %v4466_v18 = vsub.f32 %v1955_v21, %v4442_v9 }
 0x150   :  { %1783 = vmatpush.msra.mxu0 %v4202_v1  ;;  %1937 = vmatpush.msra.mxu3 %v4204_v11  ;;  %v2064_v1 = vand.u32 4294901760, %v4415_v63  ;;  %v1953_v11 = vld [vmem:[#allocation9 + $0x20] sm:$0xff]  ;;  %v2077_v21 = vsub.f32 %v4453_v4, %v2076_v55 }
 0x151   :  { %1837 = vmatmul.f32.vlgmr.msra.gmra.mxu1 %v5185_v35  ;;  %1904 = vmatpush.msra.mxu2 %v1739_v62  ;;  %v579_v62 = vperm.slane %v4439_v42, 0  ;;  %v2059_v29 = vsub.f32 %v4409_v2, %v2058_v50  ;;  %v4478_v39 = vsub.f32 %v1954_v22, %v4455_v5  ;;  %v2071_v31 = vsub.f32 %v4429_v37, %v2070_v53 }
 0x152   :  { %2031 = vmatpush.msrb.mxu1 %v2030_v40  ;;  %1786 = vmatpush.msra.mxu0 %v4215_v45  ;;  %v2048_v45 = vand.u32 4294901760, %v2047_v33  ;;  %v2065_v30 = vsub.f32 %v4415_v63, %v2064_v1  ;;  %v2082_v41 = vand.u32 4294901760, %v4466_v18  ;;  %v4504_v22 = vand.u32 4294901760, %v1950_v10 }
 0x153   :  { %1939 = vmatpush.msra.mxu3 %v4219_v43  ;;  %1906 = vmatmul.f32.vlgmr.msra.gmra.mxu2 %v3821_v51  ;;  %v4468_v43 = vand.u32 4294901760, %v1953_v11  ;;  %v2088_v40 = vand.u32 4294901760, %v4478_v39 }
 0x154   :  { %2037 = vmatpush.msrb.mxu1 %v2036_v19  ;;  %1789 = vmatpush.msra.mxu0 %v4228_v12  ;;  %v1951_v12 = vld [vmem:[#allocation9 + $0x10] sm:$0xff]  ;;  %v2072_v19 = vand.u32 4294901760, %v2071_v31  ;;  %v2083_v33 = vsub.f32 %v4466_v18, %v2082_v41  ;;  %v815_v31 = vpop.f32.mrf.mxu3 }
 0x155   :  { %1941 = vmatpush.msra.mxu3 %v4232_v57  ;;  %2129 = vmatpush.msrb.mxu2 %v4347_v46  ;;  %v622_v57 = vadd.f32 %v621_v14, %v579_v62  ;;  %v4489_v49 = vsub.f32 %v1953_v11, %v4468_v43  ;;  %v4491_v27 = vand.u32 4294901760, %v1951_v12  ;;  %v2078_v62 = vand.u32 4294901760, %v2077_v21 }
 0x156   :  { %1943 = vmatmul.f32.vlgmr.msra.gmra.mxu3 %v3821_v51  ;;  %2043 = vmatpush.msrb.mxu1 %v2042_v60  ;;  %v2060_v51 = vand.u32 4294901760, %v2059_v29  ;;  %v4515_v60 = vand.u32 4294901760, %v1949_v24  ;;  %v2089_v6 = vsub.f32 %v4478_v39, %v2088_v40  ;;  %v4525_v14 = vsub.f32 %v1950_v10, %v4504_v22 }
 0x157   :  { %1792 = vmatpush.msra.mxu0 %v4243_v32  ;;  %2132 = vmatpush.msrb.mxu2 %v4357_v3  ;;  %v2066_v32 = vand.u32 4294901760, %v2065_v30  ;;  %v2094_v35 = vand.u32 4294901760, %v4489_v49  ;;  %v4513_v11 = vsub.f32 %v1951_v12, %v4491_v27  ;;  %v2084_v30 = vand.u32 4294901760, %v2083_v33 }
 0x158   :  { %2049 = vmatpush.msrb.mxu1 %v2048_v45  ;;  %2182 = vmatpush.msrb.mxu3 %v4332_v17  ;;  %v2100_v45 = vand.u32 4294901760, %v4502_v59  ;;  %v2090_v10 = vand.u32 4294901760, %v2089_v6 }
 0x159   :  { %1795 = vmatpush.msra.mxu0 %v4254_v44  ;;  %2135 = vmatpush.msrb.mxu2 %v4368_v23  ;;  %v723_v44 = vadd.f32 %v722_v36, %v622_v57  ;;  %v2095_v12 = vsub.f32 %v4489_v49, %v2094_v35  ;;  %v4535_v57 = vsub.f32 %v1949_v24, %v4515_v60  ;;  %v884_v24 = vpop.f32.mrf.mxu0 }
 0x15a   :  { %1798 = vmatmul.f32.vlgmr.msra.gmra.mxu0 %v5186_v0  ;;  %2055 = vmatpush.msrb.mxu1 %v2054_v54  ;;  %v2106_v54 = vand.u32 4294901760, %v4513_v11 }
 0x15b   :  { %1986 = vmatpush.msrb.mxu0 %v4332_v17  ;;  %2184 = vmatpush.msrb.mxu3 %v4339_v20  ;;  %v777_v29 = vadd.f32 %v776_v28, %v723_v44  ;;  %v2096_v0 = vand.u32 4294901760, %v2095_v12  ;;  %v2118_v44 = vand.u32 4294901760, %v4535_v57 }
 0x15c   :  { %2061 = vmatpush.msrb.mxu1 %v2060_v51  ;;  %2138 = vmatpush.msrb.mxu2 %v4379_v56  ;;  %v2101_v51 = vsub.f32 %v4502_v59, %v2100_v45  ;;  %v2107_v21 = vsub.f32 %v4513_v11, %v2106_v54 }
 0x15d   :  { %1988 = vmatpush.msrb.mxu0 %v4339_v20  ;;  %2186 = vmatpush.msrb.mxu3 %v4349_v52  ;;  %v816_v36 = vadd.f32 %v815_v31, %v777_v29  ;;  %v2119_v6 = vsub.f32 %v4535_v57, %v2118_v44  ;;  %v921_v29 = vpop.f32.mrf.mxu1 }
 0x15e   :  { %2067 = vmatpush.msrb.mxu1 %v2066_v32  ;;  %2141 = vmatpush.msrb.mxu2 %v4395_v61  ;;  %v2112_v32 = vand.u32 4294901760, %v4525_v14  ;;  %v1978_v61 = vld [vmem:[#allocation9 + $0xe8] sm:$0xff] }
 0x15f   :  { %1990 = vmatpush.msrb.mxu0 %v4349_v52  ;;  %2188 = vmatpush.msrb.mxu3 %v4359_v34  ;;  %v885_v28 = vadd.f32 %v884_v24, %v816_v36 }
 0x160   :  { %2073 = vmatpush.msrb.mxu1 %v2072_v19  ;;  %2144 = vmatpush.msrb.mxu2 %v4409_v2  ;;  %v2102_v19 = vand.u32 4294901760, %v2101_v51  ;;  %v2113_v33 = vsub.f32 %v4525_v14, %v2112_v32  ;;  %v1977_v2 = vld [vmem:[#allocation9 + $0xe0] sm:$0xff] }
 0x161   :  { %1992 = vmatpush.msrb.mxu0 %v4359_v34  ;;  %2190 = vmatpush.msrb.mxu3 %v4370_v38  ;;  %v922_v31 = vadd.f32 %v921_v29, %v885_v28 }
 0x162   :  { %2079 = vmatpush.msrb.mxu1 %v2078_v62  ;;  %2147 = vmatpush.msrb.mxu2 %v4415_v63  ;;  %v2108_v62 = vand.u32 4294901760, %v2107_v21 }
 0x163   :  { %1994 = vmatpush.msrb.mxu0 %v4370_v38  ;;  %2192 = vmatpush.msrb.mxu3 %v4381_v26 }
 0x164   :  { %2085 = vmatpush.msrb.mxu1 %v2084_v30  ;;  %2150 = vmatpush.msrb.mxu2 %v4429_v37  ;;  %v2114_v30 = vand.u32 4294901760, %v2113_v33  ;;  %v1976_v37 = vld [vmem:[#allocation9 + $0xd8] sm:$0xff] }
 0x165   :  { %1996 = vmatpush.msrb.mxu0 %v4381_v26  ;;  %2194 = vmatpush.msrb.mxu3 %v4386_v16  ;;  %v962_v12 = vpop.f32.mrf.mxu2 }
 0x166   :  { %2091 = vmatpush.msrb.mxu1 %v2090_v10  ;;  %2153 = vmatpush.msrb.mxu2 %v4453_v4  ;;  %v2120_v10 = vand.u32 4294901760, %v2119_v6  ;;  %v963_v51 = vadd.f32 %v962_v12, %v922_v31  ;;  %v1980_v6 = vld [vmem:[#allocation9 + $0xf8] sm:$0xff]  ;;  %v4658_v4 = vand.u32 4294901760, %v1976_v37 }
 0x167   :  { %1998 = vmatpush.msrb.mxu0 %v4386_v16  ;;  %2196 = vmatpush.msrb.mxu3 %v4400_v7 }
 0x168   :  { %2097 = vmatpush.msrb.mxu1 %v2096_v0  ;;  %2156 = vmatpush.msrb.mxu2 %v4466_v18  ;;  %v1063_v36 = vpop.f32.mrf.mxu3 }
 0x169   :  { %2000 = vmatpush.msrb.mxu0 %v4400_v7  ;;  %2198 = vmatpush.msrb.mxu3 %v4423_v13  ;;  %v1064_v24 = vadd.f32 %v1063_v36, %v963_v51 }
 0x16a   :  { %2103 = vmatpush.msrb.mxu1 %v2102_v19  ;;  %2159 = vmatpush.msrb.mxu2 %v4478_v39  ;;  %v1156_v19 = vpop.f32.mrf.mxu1 }
 0x16b   :  { %2002 = vmatpush.msrb.mxu0 %v4423_v13  ;;  %2200 = vmatpush.msrb.mxu3 %v4442_v9 }
 0x16c   :  { %2109 = vmatpush.msrb.mxu1 %v2108_v62  ;;  %2162 = vmatpush.msrb.mxu2 %v4489_v49 }
 0x16d   :  { %2004 = vmatpush.msrb.mxu0 %v4442_v9  ;;  %2202 = vmatpush.msrb.mxu3 %v4455_v5 }
 0x16e   :  { %2115 = vmatpush.msrb.mxu1 %v2114_v30  ;;  %2165 = vmatpush.msrb.mxu2 %v4502_v59 }
 0x16f   :  { %2006 = vmatpush.msrb.mxu0 %v4455_v5  ;;  %2204 = vmatpush.msrb.mxu3 %v4468_v43 }
 0x170   :  { %2121 = vmatpush.msrb.mxu1 %v2120_v10  ;;  %2168 = vmatpush.msrb.mxu2 %v4513_v11  ;;  %v1225_v33 = vpop.f32.mrf.mxu2 }
 0x171   :  { %2008 = vmatpush.msrb.mxu0 %v4468_v43  ;;  %2206 = vmatpush.msrb.mxu3 %v4480_v8 }
 0x172   :  { %2290 = vmatpush.msra.mxu1 %v4332_v17  ;;  %v1117_v0 = vpop.f32.mrf.mxu0  ;;  %2171 = vmatpush.msrb.mxu2 %v4525_v14 }
 0x173   :  { %2010 = vmatpush.msrb.mxu0 %v4480_v8  ;;  %v1118_v21 = vadd.f32 %v1117_v0, %v1064_v24  ;;  %2208 = vmatpush.msrb.mxu3 %v4491_v27  ;;  %v1971_v24 = vld [vmem:[#allocation9 + $0xb0] sm:$0xff] }
 0x174   :  { %2292 = vmatpush.msra.mxu1 %v4339_v20  ;;  %2174 = vmatpush.msrb.mxu2 %v4535_v57  ;;  %v1262_v20 = vpop.f32.mrf.mxu3 }
 0x175   :  { %2012 = vmatpush.msrb.mxu0 %v4491_v27  ;;  %v1157_v17 = vadd.f32 %v1156_v19, %v1118_v21  ;;  %2210 = vmatpush.msrb.mxu3 %v4504_v22  ;;  %v4720_v19 = vand.u32 4294901760, %v1971_v24 }
 0x176   :  { %2294 = vmatpush.msra.mxu1 %v4349_v52 }
 0x177   :  { %2014 = vmatpush.msrb.mxu0 %v4504_v22  ;;  %v1226_v28 = vadd.f32 %v1225_v33, %v1157_v17  ;;  %2212 = vmatpush.msrb.mxu3 %v4515_v60  ;;  %v1970_v17 = vld [vmem:[#allocation9 + $0xa8] sm:$0xff] }
 0x178   :  { %2296 = vmatpush.msra.mxu1 %v4359_v34  ;;  %v4597_v34 = vand.u32 4294901760, %v1980_v6 }
 0x179   :  { %2016 = vmatpush.msrb.mxu0 %v4515_v60  ;;  %v1263_v62 = vadd.f32 %v1262_v20, %v1226_v28  ;;  %v4734_v20 = vsub.f32 %v1971_v24, %v4720_v19 }
 0x17a   :  { %2298 = vmatpush.msra.mxu1 %v4370_v38  ;;  %v4605_v38 = vsub.f32 %v1980_v6, %v4597_v34  ;;  %2327 = vmatpush.msra.mxu2 %v4597_v34 }
 0x17b   :  { %2223 = vmatpush.msra.mxu0 %v2028_v15  ;;  %v1947_v52 = vmax.f32 %v1263_v62, 0.0  ;;  %v1969_v62 = vld [vmem:[#allocation9 + $0xa0] sm:$0xff]  ;;  %v2423_v6 = vand.u32 4294901760, %v4734_v20 }
 0x17c   :  { %2300 = vmatpush.msra.mxu1 %v4381_v26  ;;  %v2369_v3 = vand.u32 4294901760, %v4605_v38 }
 0x17d   :  { %2227 = vmatpush.msra.mxu0 %v2034_v47  ;;  %v4599_v29 = vand.u32 4294901760, %v1947_v52 }
 0x17e   :  { %2302 = vmatpush.msra.mxu1 %v4386_v16  ;;  %v2370_v23 = vsub.f32 %v4605_v38, %v2369_v3  ;;  %v1979_v16 = vld [vmem:[#allocation9 + $0xf0] sm:$0xff] }
 0x17f   :  { %2231 = vmatpush.msra.mxu0 %v2040_v58  ;;  %v2018_v46 = vsub.f32 %v1947_v52, %v4599_v29  ;;  %2123 = vmatmul.f32.vlgmr.msrb.gmra.mxu1 %v4599_v29  ;;  %v4627_v58 = vand.u32 4294901760, %v1979_v16 }
 0x180   :  { %2304 = vmatpush.msra.mxu1 %v4400_v7  ;;  %v2371_v56 = vand.u32 4294901760, %v2370_v23  ;;  %v1968_v23 = vld [vmem:[#allocation9 + $0x98] sm:$0xff] }
 0x181   :  { %2235 = vmatpush.msra.mxu0 %v2046_v25  ;;  %v2019_v15 = vand.u32 4294901760, %v2018_v46  ;;  %2177 = vmatmul.f32.vlgmr.msrb.gmra.mxu2 %v2018_v46  ;;  %v4633_v7 = vsub.f32 %v1979_v16, %v4627_v58  ;;  %v4635_v25 = vand.u32 4294901760, %v1978_v61  ;;  %v1967_v16 = vld [vmem:[#allocation9 + $0x90] sm:$0xff] }
 0x182   :  { %2306 = vmatpush.msra.mxu1 %v4423_v13  ;;  %2372 = vmatpush.msra.mxu3 %v2371_v56  ;;  %v4645_v13 = vand.u32 4294901760, %v1977_v2 }
 0x183   :  { %2239 = vmatpush.msra.mxu0 %v2052_v48  ;;  %v2020_v47 = vsub.f32 %v2018_v46, %v2019_v15  ;;  %2216 = vmatmul.f32.vlgmr.msrb.gmra.mxu3 %v2019_v15  ;;  %v2375_v63 = vand.u32 4294901760, %v4633_v7  ;;  %v4643_v48 = vsub.f32 %v1978_v61, %v4635_v25  ;;  %v1966_v61 = vld [vmem:[#allocation9 + $0x88] sm:$0xff] }
 0x184   :  { %2308 = vmatpush.msra.mxu1 %v4442_v9  ;;  %2329 = vmatpush.msra.mxu2 %v4627_v58 }
 0x185   :  { %2243 = vmatpush.msra.mxu0 %v2058_v50  ;;  %v2021_v26 = vand.u32 4294901760, %v2020_v47  ;;  %v2376_v50 = vsub.f32 %v4633_v7, %v2375_v63  ;;  %v2381_v9 = vand.u32 4294901760, %v4643_v48  ;;  %v2424_v47 = vsub.f32 %v4734_v20, %v2423_v6 }
 0x186   :  { %2310 = vmatpush.msra.mxu1 %v4455_v5  ;;  %2331 = vmatpush.msra.mxu2 %v4635_v25  ;;  %v1975_v5 = vld [vmem:[#allocation9 + $0xd0] sm:$0xff] }
 0x187   :  { %2247 = vmatpush.msra.mxu0 %v2064_v1  ;;  %v4656_v1 = vsub.f32 %v1977_v2, %v4645_v13  ;;  %v2382_v18 = vsub.f32 %v4643_v48, %v2381_v9  ;;  %v4675_v39 = vand.u32 4294901760, %v1975_v5  ;;  %v1965_v2 = vld [vmem:[#allocation9 + $0x80] sm:$0xff] }
 0x188   :  { %2312 = vmatpush.msra.mxu1 %v4468_v43  ;;  %2022 = vmatmul.f32.vlgmr.msrb.gmra.mxu0 %v2021_v26  ;;  %v4759_v26 = vand.u32 4294901760, %v1968_v23 }
 0x189   :  { %2251 = vmatpush.msra.mxu0 %v2070_v53  ;;  %2333 = vmatpush.msra.mxu2 %v4645_v13  ;;  %v2377_v53 = vand.u32 4294901760, %v2376_v50  ;;  %v2387_v43 = vand.u32 4294901760, %v4656_v1  ;;  %v4687_v49 = vsub.f32 %v1975_v5, %v4675_v39  ;;  %v4764_v5 = vand.u32 4294901760, %v1967_v16 }
 0x18a   :  { %2314 = vmatpush.msra.mxu1 %v4480_v8  ;;  %v1974_v8 = vld [vmem:[#allocation9 + $0xc8] sm:$0xff] }
 0x18b   :  { %2255 = vmatpush.msra.mxu0 %v2076_v55  ;;  %v4669_v55 = vsub.f32 %v1976_v37, %v4658_v4  ;;  %2335 = vmatpush.msra.mxu2 %v4658_v4  ;;  %v2399_v59 = vand.u32 4294901760, %v4687_v49 }
 0x18c   :  { %2316 = vmatpush.msra.mxu1 %v4491_v27  ;;  %2378 = vmatpush.msra.mxu3 %v2377_v53  ;;  %v2388_v27 = vsub.f32 %v4656_v1, %v2387_v43  ;;  %v4766_v53 = vand.u32 4294901760, %v1966_v61 }
 0x18d   :  { %2259 = vmatpush.msra.mxu0 %v2082_v41  ;;  %v2383_v41 = vand.u32 4294901760, %v2382_v18  ;;  %2337 = vmatpush.msra.mxu2 %v4675_v39  ;;  %v2400_v11 = vsub.f32 %v4687_v49, %v2399_v59  ;;  %v2425_v18 = vand.u32 4294901760, %v2424_v47 }
 0x18e   :  { %2318 = vmatpush.msra.mxu1 %v4504_v22  ;;  %v4681_v22 = vand.u32 4294901760, %v1974_v8 }
 0x18f   :  { %2263 = vmatpush.msra.mxu0 %v2088_v40  ;;  %v2393_v40 = vand.u32 4294901760, %v4669_v55  ;;  %2384 = vmatpush.msra.mxu3 %v2383_v41  ;;  %v2401_v14 = vand.u32 4294901760, %v2400_v11  ;;  %v4771_v41 = vsub.f32 %v1968_v23, %v4759_v26 }
 0x190   :  { %2320 = vmatpush.msra.mxu1 %v4515_v60  ;;  %v2389_v60 = vand.u32 4294901760, %v2388_v27  ;;  %v4694_v12 = vsub.f32 %v1974_v8, %v4681_v22  ;;  %2339 = vmatpush.msra.mxu2 %v4681_v22  ;;  %v4774_v27 = vand.u32 4294901760, %v1965_v2 }
 0x191   :  { %2267 = vmatpush.msra.mxu0 %v2094_v35  ;;  %2322 = vmatmul.f32.vlgmr.msra.gmra.mxu1 %v4599_v29  ;;  %v1973_v35 = vld [vmem:[#allocation9 + $0xc0] sm:$0xff]  ;;  %v2394_v30 = vsub.f32 %v4669_v55, %v2393_v40 }
 0x192   :  { %2523 = vmatpush.msrb.mxu1 %v4597_v34  ;;  %v4696_v31 = vand.u32 4294901760, %v1973_v35  ;;  %2390 = vmatpush.msra.mxu3 %v2389_v60  ;;  %v2405_v51 = vand.u32 4294901760, %v4694_v12  ;;  %v4781_v60 = vsub.f32 %v1967_v16, %v4764_v5  ;;  %v4792_v11 = vsub.f32 %v1965_v2, %v4774_v27 }
 0x193   :  { %2271 = vmatpush.msra.mxu0 %v2100_v45  ;;  %v1972_v45 = vld [vmem:[#allocation9 + $0xb8] sm:$0xff]  ;;  %v2395_v10 = vand.u32 4294901760, %v2394_v30  ;;  %v4784_v30 = vsub.f32 %v1966_v61, %v4766_v53 }
 0x194   :  { %2525 = vmatpush.msrb.mxu1 %v4627_v58  ;;  %v4705_v36 = vsub.f32 %v1973_v35, %v4696_v31  ;;  %2341 = vmatpush.msra.mxu2 %v4696_v31  ;;  %v2406_v0 = vsub.f32 %v4694_v12, %v2405_v51 }
 0x195   :  { %2275 = vmatpush.msra.mxu0 %v2106_v54  ;;  %v4713_v54 = vand.u32 4294901760, %v1972_v45  ;;  %2396 = vmatpush.msra.mxu3 %v2395_v10  ;;  %v2441_v10 = vand.u32 4294901760, %v4771_v41 }
 0x196   :  { %2527 = vmatpush.msrb.mxu1 %v4635_v25  ;;  %v2411_v21 = vand.u32 4294901760, %v4705_v36  ;;  %v2407_v33 = vand.u32 4294901760, %v2406_v0  ;;  %v2447_v0 = vand.u32 4294901760, %v4781_v60 }
 0x197   :  { %2279 = vmatpush.msra.mxu0 %v2112_v32  ;;  %v4726_v32 = vsub.f32 %v1972_v45, %v4713_v54  ;;  %2343 = vmatpush.msra.mxu2 %v4713_v54 }
 0x198   :  { %2529 = vmatpush.msrb.mxu1 %v4645_v13  ;;  %v2412_v28 = vsub.f32 %v4705_v36, %v2411_v21  ;;  %2402 = vmatpush.msra.mxu3 %v2401_v14  ;;  %v2453_v14 = vand.u32 4294901760, %v4784_v30 }
 0x199   :  { %2283 = vmatpush.msra.mxu0 %v2118_v44  ;;  %v2417_v57 = vand.u32 4294901760, %v4726_v32  ;;  %v4738_v44 = vand.u32 4294901760, %v1970_v17  ;;  %2345 = vmatpush.msra.mxu2 %v4720_v19 }
 0x19a   :  { %2285 = vmatmul.f32.vlgmr.msra.gmra.mxu0 %v4599_v29  ;;  %2531 = vmatpush.msrb.mxu1 %v4658_v4  ;;  %v2413_v52 = vand.u32 4294901760, %v2412_v28  ;;  %v4742_v29 = vand.u32 4294901760, %v1969_v62  ;;  %v2459_v28 = vand.u32 4294901760, %v4792_v11 }
 0x19b   :  { %2470 = vmatpush.msrb.mxu0 %v4605_v38  ;;  %2408 = vmatpush.msra.mxu3 %v2407_v33  ;;  %v2418_v46 = vsub.f32 %v4726_v32, %v2417_v57  ;;  %v4750_v15 = vsub.f32 %v1970_v17, %v4738_v44  ;;  %v2442_v33 = vsub.f32 %v4771_v41, %v2441_v10  ;;  %v1303_v38 = vpop.f32.mrf.mxu0 }
 0x19c   :  { %2533 = vmatpush.msrb.mxu1 %v4675_v39  ;;  %v4757_v56 = vsub.f32 %v1969_v62, %v4742_v29  ;;  %2347 = vmatpush.msra.mxu2 %v4738_v44  ;;  %v2448_v62 = vsub.f32 %v4781_v60, %v2447_v0  ;;  %v2460_v47 = vsub.f32 %v4792_v11, %v2459_v28 }
 0x19d   :  { %2473 = vmatpush.msrb.mxu0 %v4633_v7  ;;  %2414 = vmatpush.msra.mxu3 %v2413_v52  ;;  %v2419_v37 = vand.u32 4294901760, %v2418_v46  ;;  %v2429_v50 = vand.u32 4294901760, %v4750_v15  ;;  %v2454_v52 = vsub.f32 %v4784_v30, %v2453_v14  ;;  %v2443_v46 = vand.u32 4294901760, %v2442_v33  ;;  %v1458_v7 = vpop.f32.mrf.mxu2 }
 0x19e   :  { %2535 = vmatpush.msrb.mxu1 %v4681_v22  ;;  %v2435_v8 = vand.u32 4294901760, %v4757_v56  ;;  %2349 = vmatpush.msra.mxu2 %v4742_v29  ;;  %v2449_v23 = vand.u32 4294901760, %v2448_v62  ;;  %v2461_v61 = vand.u32 4294901760, %v2460_v47 }
 0x19f   :  { %2476 = vmatpush.msrb.mxu0 %v4643_v48  ;;  %2420 = vmatpush.msra.mxu3 %v2419_v37  ;;  %v2430_v35 = vsub.f32 %v4750_v15, %v2429_v50  ;;  %v2455_v16 = vand.u32 4294901760, %v2454_v52  ;;  %v2680_v37 = vld [vmem:[#allocation10 + $0x60] sm:$0xff] }
 0x1a0   :  { %2537 = vmatpush.msrb.mxu1 %v4696_v31  ;;  %v2436_v45 = vsub.f32 %v4757_v56, %v2435_v8  ;;  %2351 = vmatpush.msra.mxu2 %v4759_v26 }
 0x1a1   :  { %2479 = vmatpush.msrb.mxu0 %v4656_v1  ;;  %2426 = vmatpush.msra.mxu3 %v2425_v18  ;;  %v2431_v24 = vand.u32 4294901760, %v2430_v35 }
 0x1a2   :  { %2539 = vmatpush.msrb.mxu1 %v4713_v54  ;;  %v2437_v17 = vand.u32 4294901760, %v2436_v45  ;;  %2353 = vmatpush.msra.mxu2 %v4764_v5 }
 0x1a3   :  { %2482 = vmatpush.msrb.mxu0 %v4669_v55  ;;  %2432 = vmatpush.msra.mxu3 %v2431_v24 }
 0x1a4   :  { %2541 = vmatpush.msrb.mxu1 %v4720_v19  ;;  %2355 = vmatpush.msra.mxu2 %v4766_v53 }
 0x1a5   :  { %2485 = vmatpush.msrb.mxu0 %v4687_v49  ;;  %2438 = vmatpush.msra.mxu3 %v2437_v17 }
 0x1a6   :  { %2543 = vmatpush.msrb.mxu1 %v4738_v44  ;;  %2357 = vmatpush.msra.mxu2 %v4774_v27 }
 0x1a7   :  { %2488 = vmatpush.msrb.mxu0 %v4694_v12  ;;  %2444 = vmatpush.msra.mxu3 %v2443_v46 }
 0x1a8   :  { %2545 = vmatpush.msrb.mxu1 %v4742_v29  ;;  %2564 = vmatpush.msrb.mxu2 %v2369_v3 }
 0x1a9   :  { %2491 = vmatpush.msrb.mxu0 %v4705_v36  ;;  %2450 = vmatpush.msra.mxu3 %v2449_v23 }
 0x1aa   :  { %2547 = vmatpush.msrb.mxu1 %v4759_v26  ;;  %2568 = vmatpush.msrb.mxu2 %v2375_v63  ;;  %v1497_v63 = vpop.f32.mrf.mxu3 }
 0x1ab   :  { %2494 = vmatpush.msrb.mxu0 %v4726_v32  ;;  %2456 = vmatpush.msra.mxu3 %v2455_v16 }
 0x1ac   :  { %2549 = vmatpush.msrb.mxu1 %v4764_v5  ;;  %2572 = vmatpush.msrb.mxu2 %v2381_v9 }
 0x1ad   :  { %2497 = vmatpush.msrb.mxu0 %v4734_v20  ;;  %2462 = vmatpush.msra.mxu3 %v2461_v61 }
 0x1ae   :  { %2551 = vmatpush.msrb.mxu1 %v4766_v53  ;;  %2576 = vmatpush.msrb.mxu2 %v2387_v43 }
 0x1af   :  { %2500 = vmatpush.msrb.mxu0 %v4750_v15  ;;  %2631 = vmatpush.msrb.mxu3 %v4597_v34  ;;  %v580_v34 = vperm.slane %v4439_v42, 1  ;;  %v1404_v42 = vpop.f32.mrf.mxu1  ;;  %v2681_v15 = vld [vmem:[#allocation10 + $0x68] sm:$0xff] }
 0x1b0   :  { %2553 = vmatpush.msrb.mxu1 %v4774_v27  ;;  %2580 = vmatpush.msrb.mxu2 %v2393_v40  ;;  %v4886_v2 = vand.u32 4294901760, %v2681_v15 }
 0x1b1   :  { %2503 = vmatpush.msrb.mxu0 %v4757_v56  ;;  %2633 = vmatpush.msrb.mxu3 %v4627_v58  ;;  %v1304_v3 = vadd.f32 %v1303_v38, %v580_v34  ;;  %v2675_v34 = vld [vmem:[#allocation10 + $0x38] sm:$0xff]  ;;  %v2674_v38 = vld [vmem:[#allocation10 + $0x30] sm:$0xff] }
 0x1b2   :  { %2584 = vmatpush.msrb.mxu2 %v2399_v59 }
 0x1b3   :  { %2506 = vmatpush.msrb.mxu0 %v4771_v41  ;;  %2635 = vmatpush.msrb.mxu3 %v4635_v25  ;;  %v1405_v58 = vadd.f32 %v1404_v42, %v1304_v3  ;;  %v2677_v41 = vld [vmem:[#allocation10 + $0x48] sm:$0xff] }
 0x1b4   :  { %2588 = vmatpush.msrb.mxu2 %v2405_v51  ;;  %v1644_v43 = vpop.f32.mrf.mxu2  ;;  %v4904_v45 = vand.u32 4294901760, %v2677_v41  ;;  %v2673_v3 = vld [vmem:[#allocation10 + $0x28] sm:$0xff] }
 0x1b5   :  { %2509 = vmatpush.msrb.mxu0 %v4781_v60  ;;  %2637 = vmatpush.msrb.mxu3 %v4645_v13  ;;  %v1459_v25 = vadd.f32 %v1458_v7, %v1405_v58 }
 0x1b6   :  { %2592 = vmatpush.msrb.mxu2 %v2411_v21  ;;  %v1566_v48 = vpop.f32.mrf.mxu0  ;;  %v4926_v52 = vsub.f32 %v2677_v41, %v4904_v45 }
 0x1b7   :  { %2512 = vmatpush.msrb.mxu0 %v4784_v30  ;;  %2639 = vmatpush.msrb.mxu3 %v4658_v4  ;;  %v1498_v13 = vadd.f32 %v1497_v63, %v1459_v25  ;;  %v1603_v1 = vpop.f32.mrf.mxu1  ;;  %v4901_v30 = vsub.f32 %v2681_v15, %v4886_v2 }
 0x1b8   :  { %2596 = vmatpush.msrb.mxu2 %v2417_v57  ;;  %v2767_v63 = vand.u32 4294901760, %v4926_v52 }
 0x1b9   :  { %2515 = vmatpush.msrb.mxu0 %v4792_v11  ;;  %2641 = vmatpush.msrb.mxu3 %v4675_v39  ;;  %v1567_v9 = vadd.f32 %v1566_v48, %v1498_v13  ;;  %v1745_v39 = vpop.f32.mrf.mxu3  ;;  %v2743_v33 = vand.u32 4294901760, %v4901_v30  ;;  %v2672_v48 = vld [vmem:[#allocation10 + $0x20] sm:$0xff] }
 0x1ba   :  { %2600 = vmatpush.msrb.mxu2 %v2423_v6  ;;  %v2683_v6 = vld [vmem:[#allocation10 + $0x78] sm:$0xff] }
 0x1bb   :  { %2643 = vmatpush.msrb.mxu3 %v4681_v22  ;;  %v1604_v4 = vadd.f32 %v1603_v1, %v1567_v9  ;;  %v4882_v56 = vand.u32 4294901760, %v2683_v6  ;;  %v2744_v47 = vsub.f32 %v4901_v30, %v2743_v33  ;;  %v4956_v9 = vand.u32 4294901760, %v2675_v34 }
 0x1bc   :  { %2604 = vmatpush.msrb.mxu2 %v2429_v50  ;;  %v2679_v50 = vld [vmem:[#allocation10 + $0x58] sm:$0xff]  ;;  %v4958_v1 = vand.u32 4294901760, %v2674_v38 }
 0x1bd   :  { %2645 = vmatpush.msrb.mxu3 %v4696_v31  ;;  %v1645_v55 = vadd.f32 %v1644_v43, %v1604_v4  ;;  %v4890_v18 = vand.u32 4294901760, %v2679_v50  ;;  %v4895_v35 = vsub.f32 %v2683_v6, %v4882_v56  ;;  %2689 = vmatpush.msra.mxu0 %v4882_v56  ;;  %v2745_v13 = vand.u32 4294901760, %v2744_v47 }
 0x1be   :  { %2608 = vmatpush.msrb.mxu2 %v2435_v8  ;;  %v4960_v4 = vand.u32 4294901760, %v2673_v3 }
 0x1bf   :  { %2647 = vmatpush.msrb.mxu3 %v4713_v54  ;;  %v1746_v40 = vadd.f32 %v1745_v39, %v1645_v55  ;;  %v4911_v11 = vsub.f32 %v2679_v50, %v4890_v18  ;;  %v2671_v39 = vld [vmem:[#allocation10 + $0x18] sm:$0xff] }
 0x1c0   :  { %2612 = vmatpush.msrb.mxu2 %v2441_v10 }
 0x1c1   :  { %2649 = vmatpush.msrb.mxu3 %v4720_v19  ;;  %v2755_v62 = vand.u32 4294901760, %v4911_v11 }
 0x1c2   :  { %2616 = vmatpush.msrb.mxu2 %v2447_v0 }
 0x1c3   :  { %2651 = vmatpush.msrb.mxu3 %v4738_v44  ;;  %v2756_v25 = vsub.f32 %v4911_v11, %v2755_v62 }
 0x1c4   :  { %2620 = vmatpush.msrb.mxu2 %v2453_v14  ;;  %v2731_v14 = vand.u32 4294901760, %v4895_v35 }
 0x1c5   :  { %2653 = vmatpush.msrb.mxu3 %v4742_v29  ;;  %v2682_v29 = vld [vmem:[#allocation10 + $0x70] sm:$0xff] }
 0x1c6   :  { %2624 = vmatpush.msrb.mxu2 %v2459_v28  ;;  %v2732_v46 = vsub.f32 %v4895_v35, %v2731_v14 }
 0x1c7   :  { %2655 = vmatpush.msrb.mxu3 %v4759_v26  ;;  %v4884_v26 = vand.u32 4294901760, %v2682_v29 }
 0x1c8   :  { %v2733_v42 = vand.u32 4294901760, %v2732_v46 }
 0x1c9   :  { %2657 = vmatpush.msrb.mxu3 %v4764_v5  ;;  %v2678_v5 = vld [vmem:[#allocation10 + $0x50] sm:$0xff]  ;;  %v4898_v60 = vsub.f32 %v2682_v29, %v4884_v26  ;;  %2691 = vmatpush.msra.mxu0 %v4884_v26 }
 0x1ca   :  { %v4892_v8 = vand.u32 4294901760, %v2678_v5  ;;  %2734 = vmatpush.msra.mxu1 %v2733_v42  ;;  %v2670_v42 = vld [vmem:[#allocation10 + $0x10] sm:$0xff] }
 0x1cb   :  { %2659 = vmatpush.msrb.mxu3 %v4766_v53  ;;  %v4888_v53 = vand.u32 4294901760, %v2680_v37  ;;  %v2737_v17 = vand.u32 4294901760, %v4898_v60  ;;  %2693 = vmatpush.msra.mxu0 %v4886_v2 }
 0x1cc   :  { %v4914_v24 = vsub.f32 %v2678_v5, %v4892_v8 }
 0x1cd   :  { %2661 = vmatpush.msrb.mxu3 %v4774_v27  ;;  %v2676_v27 = vld [vmem:[#allocation10 + $0x40] sm:$0xff]  ;;  %v4908_v10 = vsub.f32 %v2680_v37, %v4888_v53  ;;  %v2738_v23 = vsub.f32 %v4898_v60, %v2737_v17  ;;  %2695 = vmatpush.msra.mxu0 %v4888_v53 }
 0x1ce   :  { %v1838_v12 = vpop.f32.mrf.mxu1  ;;  %v4916_v0 = vand.u32 4294901760, %v2676_v27  ;;  %v2761_v16 = vand.u32 4294901760, %v4914_v24 }
 0x1cf   :  { %v2749_v28 = vand.u32 4294901760, %v4908_v10  ;;  %v2739_v58 = vand.u32 4294901760, %v2738_v23  ;;  %2697 = vmatpush.msra.mxu0 %v4890_v18 }
 0x1d0   :  { %v4942_v61 = vsub.f32 %v2676_v27, %v4916_v0  ;;  %v2762_v43 = vsub.f32 %v4914_v24, %v2761_v16 }
 0x1d1   :  { %v2750_v7 = vsub.f32 %v4908_v10, %v2749_v28  ;;  %2740 = vmatpush.msra.mxu1 %v2739_v58  ;;  %2699 = vmatpush.msra.mxu0 %v4892_v8  ;;  %v5038_v58 = vand.u32 4294901760, %v2670_v42 }
 0x1d2   :  { %v2773_v55 = vand.u32 4294901760, %v4942_v61 }
 0x1d3   :  { %2746 = vmatpush.msra.mxu1 %v2745_v13  ;;  %2701 = vmatpush.msra.mxu0 %v4904_v45  ;;  %v2668_v13 = vld [vmem:[#allocation10] sm:$0xff] }
 0x1d5   :  { %2703 = vmatpush.msra.mxu0 %v4916_v0 }
 0x1d6   :  { %v1907_v59 = vpop.f32.mrf.mxu2 }
 0x1d7   :  { %v1799_v22 = vpop.f32.mrf.mxu0  ;;  %2705 = vmatpush.msra.mxu0 %v4956_v9 }
 0x1d8   :  { %v1800_v49 = vadd.f32 %v1799_v22, %v1746_v40  ;;  %v2751_v40 = vand.u32 4294901760, %v2750_v7  ;;  %v4969_v22 = vsub.f32 %v2675_v34, %v4956_v9  ;;  %v2669_v7 = vld [vmem:[#allocation10 + $0x8] sm:$0xff] }
 0x1d9   :  { %v1944_v36 = vpop.f32.mrf.mxu3  ;;  %2707 = vmatpush.msra.mxu0 %v4958_v1 }
 0x1da   :  { %v1839_v31 = vadd.f32 %v1838_v12, %v1800_v49  ;;  %v4973_v49 = vsub.f32 %v2674_v38, %v4958_v1  ;;  %v4975_v12 = vand.u32 4294901760, %v2672_v48  ;;  %2752 = vmatpush.msra.mxu1 %v2751_v40  ;;  %v2718_v40 = vand.u32 4294901760, %v2668_v13 }
 0x1db   :  { %2709 = vmatpush.msra.mxu0 %v4960_v4 }
 0x1dc   :  { %v1908_v51 = vadd.f32 %v1907_v59, %v1839_v31  ;;  %v2768_v31 = vsub.f32 %v4926_v52, %v2767_v63  ;;  %v2757_v59 = vand.u32 4294901760, %v2756_v25  ;;  %v2808_v25 = vsub.f32 %v2670_v42, %v5038_v58 }
 0x1dd   :  { %2711 = vmatpush.msra.mxu0 %v4975_v12 }
 0x1de   :  { %v1945_v54 = vadd.f32 %v1944_v36, %v1908_v51  ;;  %v2779_v51 = vand.u32 4294901760, %v4969_v22  ;;  %v4985_v36 = vsub.f32 %v2673_v3, %v4960_v4  ;;  %2758 = vmatpush.msra.mxu1 %v2757_v59 }
 0x1e0   :  { %v1948_v21 = vmax.f32 %v1945_v54, 0.0  ;;  %v4987_v54 = vand.u32 4294901760, %v2671_v39  ;;  %v2791_v6 = vand.u32 4294901760, %v4985_v36 }
 0x1e2   :  { %v2358_v19 = vand.u32 4294901760, %v1948_v21  ;;  %v5007_v29 = vsub.f32 %v2671_v39, %v4987_v54  ;;  %v2792_v41 = vsub.f32 %v4985_v36, %v2791_v6  ;;  %2713 = vmatpush.msra.mxu0 %v4987_v54 }
 0x1e4   :  { %v2359_v32 = vsub.f32 %v1948_v21, %v2358_v19  ;;  %2464 = vmatmul.f32.vlgmr.msra.gmra.mxu3 %v2358_v19  ;;  %v2763_v21 = vand.u32 4294901760, %v2762_v43  ;;  %v2803_v27 = vand.u32 4294901760, %v5007_v29  ;;  %v2793_v47 = vand.u32 4294901760, %v2792_v41  ;;  %2715 = vmatpush.msra.mxu0 %v5038_v58 }
 0x1e5   :  { %2885 = vmatpush.msra.mxu3 %v4882_v56  ;;  %v2809_v43 = vand.u32 4294901760, %v2808_v25 }
 0x1e6   :  { %v2360_v20 = vand.u32 4294901760, %v2359_v32  ;;  %2518 = vmatmul.f32.vlgmr.msrb.gmra.mxu0 %v2359_v32  ;;  %2764 = vmatpush.msra.mxu1 %v2763_v21  ;;  %v2804_v34 = vsub.f32 %v5007_v29, %v2803_v27  ;;  %v2820_v21 = vsub.f32 %v2668_v13, %v2718_v40 }
 0x1e7   :  { %2887 = vmatpush.msra.mxu3 %v4884_v26 }
 0x1e8   :  { %v2361_v57 = vsub.f32 %v2359_v32, %v2360_v20  ;;  %2557 = vmatmul.f32.vlgmr.msrb.gmra.mxu1 %v2360_v20  ;;  %v2785_v32 = vand.u32 4294901760, %v4973_v49  ;;  %v4997_v20 = vsub.f32 %v2672_v48, %v4975_v12  ;;  %v2805_v3 = vand.u32 4294901760, %v2804_v34 }
 0x1e9   :  { %2889 = vmatpush.msra.mxu3 %v4886_v2  ;;  %v5041_v48 = vand.u32 4294901760, %v2669_v7 }
 0x1ea   :  { %v2362_v44 = vand.u32 4294901760, %v2361_v57  ;;  %v2769_v57 = vand.u32 4294901760, %v2768_v31  ;;  %v2786_v37 = vsub.f32 %v4973_v49, %v2785_v32  ;;  %v2797_v50 = vand.u32 4294901760, %v4997_v20 }
 0x1eb   :  { %2891 = vmatpush.msra.mxu3 %v4888_v53  ;;  %v2814_v39 = vsub.f32 %v2669_v7, %v5041_v48  ;;  %2717 = vmatpush.msra.mxu0 %v5041_v48  ;;  %v2810_v31 = vsub.f32 %v2808_v25, %v2809_v43 }
 0x1ec   :  { %2363 = vmatmul.f32.vlgmr.msra.gmra.mxu2 %v2362_v44  ;;  %2663 = vmatmul.f32.vlgmr.msrb.gmra.mxu3 %v2358_v19  ;;  %v2780_v44 = vsub.f32 %v4969_v22, %v2779_v51  ;;  %v2787_v46 = vand.u32 4294901760, %v2786_v37  ;;  %v2798_v23 = vsub.f32 %v4997_v20, %v2797_v50 }
 0x1ed   :  { %2832 = vmatpush.msra.mxu2 %v4895_v35  ;;  %2893 = vmatpush.msra.mxu3 %v4890_v18  ;;  %v2815_v59 = vand.u32 4294901760, %v2814_v39 }
 0x1ee   :  { %2770 = vmatpush.msra.mxu1 %v2769_v57  ;;  %v2781_v5 = vand.u32 4294901760, %v2780_v44  ;;  %v2799_v38 = vand.u32 4294901760, %v2798_v23  ;;  %2719 = vmatpush.msra.mxu0 %v2718_v40  ;;  %v2821_v44 = vand.u32 4294901760, %v2820_v21 }
 0x1ef   :  { %2835 = vmatpush.msra.mxu2 %v4898_v60  ;;  %2895 = vmatpush.msra.mxu3 %v4892_v8  ;;  %v2816_v57 = vsub.f32 %v2814_v39, %v2815_v59 }
 0x1f0   :  { %2926 = vmatpush.msrb.mxu0 %v2731_v14  ;;  %v2822_v37 = vsub.f32 %v2820_v21, %v2821_v44 }
 0x1f1   :  { %2838 = vmatpush.msra.mxu2 %v4901_v30  ;;  %2897 = vmatpush.msra.mxu3 %v4904_v45 }
 0x1f2   :  { %2930 = vmatpush.msrb.mxu0 %v2737_v17 }
 0x1f3   :  { %2841 = vmatpush.msra.mxu2 %v4908_v10  ;;  %2899 = vmatpush.msra.mxu3 %v4916_v0 }
 0x1f4   :  { %2626 = vmatmul.f32.vlgmr.msrb.gmra.mxu2 %v2358_v19  ;;  %v2774_v19 = vsub.f32 %v4942_v61, %v2773_v55  ;;  %2934 = vmatpush.msrb.mxu0 %v2743_v33 }
 0x1f5   :  { %2844 = vmatpush.msra.mxu2 %v4911_v11  ;;  %2901 = vmatpush.msra.mxu3 %v4956_v9 }
 0x1f6   :  { %v2775_v15 = vand.u32 4294901760, %v2774_v19  ;;  %v2811_v19 = vand.u32 4294901760, %v2810_v31  ;;  %2938 = vmatpush.msrb.mxu0 %v2749_v28 }
 0x1f7   :  { %2847 = vmatpush.msra.mxu2 %v4914_v24  ;;  %2903 = vmatpush.msra.mxu3 %v4958_v1 }
 0x1f8   :  { %2776 = vmatpush.msra.mxu1 %v2775_v15  ;;  %v2817_v15 = vand.u32 4294901760, %v2816_v57  ;;  %2942 = vmatpush.msrb.mxu0 %v2755_v62 }
 0x1f9   :  { %2850 = vmatpush.msra.mxu2 %v4926_v52  ;;  %2905 = vmatpush.msra.mxu3 %v4960_v4 }
 0x1fa   :  { %2782 = vmatpush.msra.mxu1 %v2781_v5  ;;  %v2823_v5 = vand.u32 4294901760, %v2822_v37  ;;  %2946 = vmatpush.msrb.mxu0 %v2761_v16 }
 0x1fb   :  { %2853 = vmatpush.msra.mxu2 %v4942_v61  ;;  %2907 = vmatpush.msra.mxu3 %v4975_v12 }
 0x1fc   :  { %2788 = vmatpush.msra.mxu1 %v2787_v46  ;;  %2950 = vmatpush.msrb.mxu0 %v2767_v63 }
 0x1fd   :  { %2856 = vmatpush.msra.mxu2 %v4969_v22  ;;  %2909 = vmatpush.msra.mxu3 %v4987_v54 }
 0x1fe   :  { %2794 = vmatpush.msra.mxu1 %v2793_v47  ;;  %2954 = vmatpush.msrb.mxu0 %v2773_v55 }
 0x1ff   :  { %2859 = vmatpush.msra.mxu2 %v4973_v49  ;;  %2911 = vmatpush.msra.mxu3 %v5038_v58 }
 0x200   :  { %2800 = vmatpush.msra.mxu1 %v2799_v38  ;;  %2958 = vmatpush.msrb.mxu0 %v2779_v51 }
 0x201   :  { %2862 = vmatpush.msra.mxu2 %v4985_v36  ;;  %2913 = vmatpush.msra.mxu3 %v5041_v48  ;;  %v3050_v36 = vld [vmem:[%s5106_s8] ss:$0 sm:$0xff] }
 0x202   :  { %2806 = vmatpush.msra.mxu1 %v2805_v3  ;;  %2962 = vmatpush.msrb.mxu0 %v2785_v32 }
 0x203   :  { %2865 = vmatpush.msra.mxu2 %v4997_v20  ;;  %2915 = vmatpush.msra.mxu3 %v2718_v40 }
 0x204   :  { %2812 = vmatpush.msra.mxu1 %v2811_v19  ;;  %2966 = vmatpush.msrb.mxu0 %v2791_v6 }
 0x205   :  { %2868 = vmatpush.msra.mxu2 %v5007_v29 }
 0x206   :  { %2818 = vmatpush.msra.mxu1 %v2817_v15  ;;  %2970 = vmatpush.msrb.mxu0 %v2797_v50  ;;  %v2217_v60 = vpop.f32.mrf.mxu3 }
 0x207   :  { %2871 = vmatpush.msra.mxu2 %v2808_v25 }
 0x208   :  { %2824 = vmatpush.msra.mxu1 %v2823_v5  ;;  %2974 = vmatpush.msrb.mxu0 %v2803_v27 }
 0x209   :  { %2874 = vmatpush.msra.mxu2 %v2814_v39 }
 0x20a   :  { %2993 = vmatpush.msrb.mxu1 %v4882_v56  ;;  %v3049_v56 = vld [vmem:[%s5104_s6] ss:$0 sm:$0xff]  ;;  %2978 = vmatpush.msrb.mxu0 %v2809_v43 }
 0x20b   :  { %2877 = vmatpush.msra.mxu2 %v2820_v21 }
 0x20c   :  { %2995 = vmatpush.msrb.mxu1 %v4884_v26  ;;  %v2023_v26 = vpop.f32.mrf.mxu0  ;;  %2982 = vmatpush.msrb.mxu0 %v2815_v59 }
 0x20e   :  { %2997 = vmatpush.msrb.mxu1 %v4886_v2  ;;  %v2024_v2 = vadd.f32 %v3049_v56, %v2023_v26  ;;  %2986 = vmatpush.msrb.mxu0 %v2821_v44 }
 0x210   :  { %2999 = vmatpush.msrb.mxu1 %v4888_v53  ;;  %v2124_v53 = vpop.f32.mrf.mxu1 }
 0x212   :  { %3001 = vmatpush.msrb.mxu1 %v4890_v18  ;;  %v2125_v18 = vadd.f32 %v2124_v53, %v2024_v2 }
 0x214   :  { %3003 = vmatpush.msrb.mxu1 %v4892_v8  ;;  %v2178_v8 = vpop.f32.mrf.mxu2 }
 0x215   :  { %v2179_v35 = vadd.f32 %v2178_v8, %v2125_v18 }
 0x216   :  { %3005 = vmatpush.msrb.mxu1 %v4904_v45 }
 0x217   :  { %v2218_v30 = vadd.f32 %v2217_v60, %v2179_v35  ;;  %v2286_v45 = vpop.f32.mrf.mxu0 }
 0x218   :  { %3007 = vmatpush.msrb.mxu1 %v4916_v0  ;;  %v2323_v11 = vpop.f32.mrf.mxu1 }
 0x219   :  { %v2287_v10 = vadd.f32 %v2286_v45, %v2218_v30 }
 0x21a   :  { %3009 = vmatpush.msrb.mxu1 %v4956_v9 }
 0x21b   :  { %v2324_v24 = vadd.f32 %v2323_v11, %v2287_v10 }
 0x21c   :  { %3011 = vmatpush.msrb.mxu1 %v4958_v1 }
 0x21e   :  { %3013 = vmatpush.msrb.mxu1 %v4960_v4 }
 0x220   :  { %3015 = vmatpush.msrb.mxu1 %v4975_v12 }
 0x222   :  { %3017 = vmatpush.msrb.mxu1 %v4987_v54 }
 0x224   :  { %3019 = vmatpush.msrb.mxu1 %v5038_v58 }
 0x226   :  { %3021 = vmatpush.msrb.mxu1 %v5041_v48 }
 0x228   :  { %3023 = vmatpush.msrb.mxu1 %v2718_v40 }
 0x263   :  { %v2519_v28 = vpop.f32.mrf.mxu0 }
 0x265   :  { %v2558_v52 = vpop.f32.mrf.mxu1 }
 0x267   :  { %v2465_v0 = vpop.f32.mrf.mxu3 }
 0x26f   :  { %v2364_v14 = vpop.f32.mrf.mxu2  ;;  %v2664_v9 = vpop.f32.mrf.mxu3 }
 0x270   :  { %v2365_v17 = vadd.f32 %v2364_v14, %v2324_v24 }
 0x272   :  { %v2466_v33 = vadd.f32 %v2465_v0, %v2365_v17 }
 0x274   :  { %v2520_v62 = vadd.f32 %v2519_v28, %v2466_v33 }
 0x276   :  { %v2559_v16 = vadd.f32 %v2558_v52, %v2520_v62 }
 0x277   :  { %v2627_v61 = vpop.f32.mrf.mxu2 }
 0x278   :  { %v2628_v63 = vadd.f32 %v2627_v61, %v2559_v16 }
 0x27a   :  { %v2665_v1 = vadd.f32 %v2664_v9, %v2628_v63 }
 0x27c   :  { %v2667_v4 = vmax.f32 %v2665_v1, 0.0 }
 0x27e   :  { %v2720_v55 = vand.u32 4294901760, %v2667_v4 }
 0x280   :  { %v2721_v22 = vsub.f32 %v2667_v4, %v2720_v55  ;;  %2826 = vmatmul.f32.vlgmr.msra.gmra.mxu1 %v2720_v55 }
 0x282   :  { %2880 = vmatmul.f32.vlgmr.msra.gmra.mxu2 %v2721_v22  ;;  %v2722_v49 = vand.u32 4294901760, %v2721_v22 }
 0x284   :  { %2919 = vmatmul.f32.vlgmr.msra.gmra.mxu3 %v2722_v49  ;;  %v2723_v12 = vsub.f32 %v2721_v22, %v2722_v49 }
 0x286   :  { %v2724_v51 = vand.u32 4294901760, %v2723_v12 }
 0x288   :  { %2725 = vmatmul.f32.vlgmr.msra.gmra.mxu0 %v2724_v51  ;;  %3025 = vmatmul.f32.vlgmr.msrb.gmra.mxu1 %v2720_v55 }
 0x290   :  { %2988 = vmatmul.f32.vlgmr.msrb.gmra.mxu0 %v2720_v55 }
 0x2fd   :  { %v2827_v54 = vpop.f32.mrf.mxu1 }
 0x305   :  { %v2726_v32 = vpop.f32.mrf.mxu0  ;;  %v2881_v29 = vpop.f32.mrf.mxu2 }
 0x306   :  { %v2727_v20 = vadd.f32 %v3050_v36, %v2726_v32  ;;  %v3026_v47 = vpop.f32.mrf.mxu1 }
 0x307   :  { %v2920_v41 = vpop.f32.mrf.mxu3 }
 0x308   :  { %v2828_v6 = vadd.f32 %v2827_v54, %v2727_v20 }
 0x30a   :  { %v2882_v50 = vadd.f32 %v2881_v29, %v2828_v6 }
 0x30c   :  { %v2921_v27 = vadd.f32 %v2920_v41, %v2882_v50 }
 0x30d   :  { %v2989_v46 = vpop.f32.mrf.mxu0 }
 0x30e   :  { %v2990_v23 = vadd.f32 %v2989_v46, %v2921_v27 }
 0x310   :  { %v3027_v34 = vadd.f32 %v3026_v47, %v2990_v23 }
 0x312   :  { %3030 = vst.msk [vmem:[%s5107_s9] sm:$0xff] %vm3029_vm1, %v3027_v34 }
 0x313   :  { %3035 = vsyncpa [#allocation3], 1 }
 0x314   :  { %3036 = vsyncpa [#allocation5], 1 }
 0x315   :  { %3037 = vsyncpa [#allocation8], 1 }
 0x316   :  { %3038 = vsyncpa [#allocation11], 1 }

</bundles_post_ra>
